<compile_context>
chip_gen: v7x
topology: tpu7x:2x2x1
jax: 0.10.0
libtpu: 0.0.40
codegen_flags: <defaults>
</compile_context>

<pallas_src>
import functools

import jax
import jax.numpy as jnp
from jax.experimental import pallas as pl
from jax.experimental.pallas import tpu as pltpu

LRELU_SLOPE = 0.1
MPD_PERIODS = (2, 3, 5)   # hp.mpd_periods — HiFiGAN uses (2,3,5,7,11); subset keeps demo fast


# ---------------------------------------------------------------------------
# Pallas kernels
# ---------------------------------------------------------------------------
def _conv_fused_kernel(K, stride, input_slope, x_ref, w_ref, b_ref, o_ref):
    """Fused (K,1)-conv layer tile.

    x_ref: (TN, H_pad, Cin)  f32, zero-padded along H (pre-activation of prev layer)
    w_ref: (K*Cin, CT)       bf16, tap-major / channel-minor flattened weights
    b_ref: (1, CT)           f32
    o_ref: (TN, H_out, CT)   f32 pre-activation output (== torch fmap entry)
    """
    TN, H_out, CT = o_ref.shape
    Cin = x_ref.shape[-1]
    R = TN * H_out

    cols = []
    for k in range(K):                      # static, unrolled: slicing only, no small dots
        sl = pl.ds(k, H_out) if stride == 1 else pl.ds(k, H_out, stride)
        xk = x_ref[:, sl, :]                # (TN, H_out, Cin) strided sublane window
        if input_slope is not None:         # previous layer's leaky_relu, fused on load
            xk = jnp.where(xk >= 0, xk, input_slope * xk)
        cols.append(xk.reshape(R, Cin))
    patches = jnp.concatenate(cols, axis=1)                      # (R, K*Cin) f32
    acc = jnp.dot(patches.astype(jnp.bfloat16), w_ref[...],      # one bf16 MXU matmul
                  preferred_element_type=jnp.float32)            # (R, CT) f32 accumulate
    acc = acc + b_ref[...]
    o_ref[...] = acc.reshape(TN, H_out, CT)


def _conv_post_kernel(K, slope, x_ref, w_ref, b_ref, o_ref):
    """conv_post (Cout == 1) with a lane-dense logits output.

    x_ref: (N, H_pad, Cin) f32 ;  w_ref: (1, K*Cin) bf16 ;  b_ref: (1, 1) f32
    o_ref: (1, N*H_out)    f32 logits row (n-major, h-minor)
    """
    N, _, Cin = x_ref.shape
    R = o_ref.shape[1]
    H_out = R // N

    cols = []
    for k in range(K):
        xk = x_ref[:, pl.ds(k, H_out), :]
        xk = jnp.where(xk >= 0, xk, slope * xk)          # leaky_relu of previous layer
        cols.append(xk.reshape(R, Cin))
    patches = jnp.concatenate(cols, axis=1).astype(jnp.bfloat16)   # (R, K*Cin)
    # (1, K*Cin) @ (R, K*Cin)^T -> (1, R): the row axis lands on lanes (dense store,
    # no last-dim-1 masked partial stores).
    acc = jax.lax.dot_general(w_ref[...], patches,
                              (((1,), (1,)), ((), ())),
                              preferred_element_type=jnp.float32)
    o_ref[...] = acc + b_ref[...]


# ---------------------------------------------------------------------------
# Wrappers (tiling / BlockSpecs)
# ---------------------------------------------------------------------------
def _row_tile(N, H_out):
    """Pick a divisor row-tile: >=2 tiles along N when possible, ~512 matmul rows/tile."""
    tn = max(1, min(N, 512 // max(H_out, 1)))
    if N > 1:
        tn = min(tn, max(1, N // 2))
    while N % tn:
        tn -= 1
    return tn


def conv_layer(x, w, b, *, stride, pad, input_slope):
    """One DiscriminatorP conv layer: x (N, H, Cin) f32 -> (N, H_out, Cout) f32."""
    N, H, Cin = x.shape
    K, _, Cout = w.shape
    # TODO(synk): fold the (pad,0) zero padding and an overlapping-window H-tiling for
    # very long waveforms into the kernel instead of jnp.pad + full-H row tiles.
    xp = jnp.pad(x, ((0, 0), (pad, pad), (0, 0)))
    H_pad = H + 2 * pad
    H_out = (H_pad - K) // stride + 1

    tn = _row_tile(N, H_out)
    ct = 128 if Cout % 128 == 0 else Cout            # 128-wide Cout tiles for wide layers
    grid = (N // tn, Cout // ct)

    wf = w.reshape(K * Cin, Cout).astype(jnp.bfloat16)
    bf = b.reshape(1, Cout).astype(jnp.float32)

    kern = functools.partial(_conv_fused_kernel, K, stride, input_slope)
    return pl.pallas_call(
        kern,
        out_shape=jax.ShapeDtypeStruct((N, H_out, Cout), jnp.float32),
        grid=grid,
        in_specs=[
            pl.BlockSpec((tn, H_pad, Cin), lambda i, j: (i, 0, 0)),
            pl.BlockSpec((K * Cin, ct), lambda i, j: (0, j)),
            pl.BlockSpec((1, ct), lambda i, j: (0, j)),
        ],
        out_specs=pl.BlockSpec((tn, H_out, ct), lambda i, j: (i, 0, j)),
        compiler_params=pltpu.CompilerParams(
            dimension_semantics=("parallel", "parallel"),
            vmem_limit_bytes=64 * 1024 * 1024),
    )(xp, wf, bf)


def conv_post_layer(x, w, b, *, pad, slope):
    """conv_post: x (N, H, 512) f32 -> lane-dense logits (1, N*H_out) f32."""
    N, H, Cin = x.shape
    K = w.shape[0]
    xp = jnp.pad(x, ((0, 0), (pad, pad), (0, 0)))
    H_out = H + 2 * pad - K + 1
    wf = w.reshape(1, K * Cin).astype(jnp.bfloat16)
    bf = b.reshape(1, 1).astype(jnp.float32)
    vspec = pl.BlockSpec(memory_space=pltpu.MemorySpace.VMEM)
    kern = functools.partial(_conv_post_kernel, K, slope)
    return pl.pallas_call(
        kern,
        out_shape=jax.ShapeDtypeStruct((1, N * H_out), jnp.float32),
        in_specs=[vspec, vspec, vspec],
        out_specs=vspec,
        compiler_params=pltpu.CompilerParams(vmem_limit_bytes=64 * 1024 * 1024),
    )(xp, wf, bf)


# ---------------------------------------------------------------------------
# Parameters (deterministic synthetic; weight_norm at init keeps weight == v).
# ---------------------------------------------------------------------------
def _init_conv(key, K, cin, cout):
    kw, kb = jax.random.split(key)
    scale = 1.0 / jnp.sqrt(jnp.float32(cin * K))
    w = jax.random.uniform(kw, (K, cin, cout), jnp.float32, -scale, scale)
    b = jax.random.uniform(kb, (cout,), jnp.float32, -scale, scale)
    return w, b


def make_discriminator_p_params(seed):
    # HiFiGAN_small branch of DiscriminatorP.__init__
    chans = [1, 32, 128, 256, 512, 512]
    strides = [3, 3, 3, 3, 1]
    keys = jax.random.split(jax.random.PRNGKey(seed), 6)
    convs = []
    for i in range(5):
        w, b = _init_conv(keys[i], 5, chans[i], chans[i + 1])
        convs.append((w, b, strides[i], 2))          # kernel (5,1), pad (2,0)
    w, b = _init_conv(keys[5], 3, 512, 1)            # conv_post: (3,1), stride 1, pad (1,0)
    return {"convs": convs, "post": (w, b, 1, 1)}


# ---------------------------------------------------------------------------
# Forward passes (glue in plain JAX, all conv math in Pallas).
# ---------------------------------------------------------------------------
def discriminator_p_forward(x, period, params):
    """x: (b, 1, t) f32 (torch NCT). Returns (logits, fmap) with torch shapes/semantics."""
    b, c, t = x.shape
    if t % period != 0:
        n_pad = period - t % period
        x = jnp.pad(x, ((0, 0), (0, 0), (0, n_pad)), mode="reflect")
        t = t + n_pad
    H, W = t // period, period
    # torch view (b, c, H, W)  ->  fold W into rows: (N = b*W, H, Cin)
    h = jnp.transpose(x.reshape(b, c, H, W), (0, 3, 2, 1)).reshape(b * W, H, c)

    fmap = []
    in_slope = None                                   # raw waveform: no activation on load
    for (w, bias, stride, pad) in params["convs"]:
        h = conv_layer(h, w, bias, stride=stride, pad=pad, input_slope=in_slope)
        Ho, Cout = h.shape[1], h.shape[2]
        # fmap entry = pre-activation conv output, converted back to torch NCHW.
        fmap.append(jnp.transpose(h.reshape(b, W, Ho, Cout), (0, 3, 2, 1)))
        in_slope = LRELU_SLOPE                        # leaky_relu fused into next layer's load

    wp, bp, _, padp = params["post"]
    logits = conv_post_layer(h, wp, bp, pad=padp, slope=LRELU_SLOPE)   # (1, b*W*Ho)
    Ho = h.shape[1] + 2 * padp - wp.shape[0] + 1
    # reorder (n = b*W + w)-major / h-minor -> torch flatten order (h-major / w-minor)
    logits = jnp.transpose(logits.reshape(b, W, Ho), (0, 2, 1)).reshape(b, Ho * W)
    return logits, fmap


def multi_period_discriminator_forward(y, y_hat, all_params):
    B = y.shape[0]
    yy = jnp.concatenate([y, y_hat], axis=0)          # one shared pass per period
    y_d_rs, y_d_gs, fmap_rs, fmap_gs = [], [], [], []
    for period, params in zip(MPD_PERIODS, all_params):
        logits, fmap = discriminator_p_forward(yy, period, params)
        y_d_rs.append(logits[:B])
        y_d_gs.append(logits[B:])
        fmap_rs.append([f[:B] for f in fmap])
        fmap_gs.append([f[B:] for f in fmap])
    return y_d_rs, y_d_gs, fmap_rs, fmap_gs


if __name__ == "__main__":
    key = jax.random.PRNGKey(0)
    k_y, k_g = jax.random.split(key)
    # (batch=2, channels=1, t=128) — mono waveform chunks, as DiscriminatorP expects.
    y = jax.random.normal(k_y, (2, 1, 128), jnp.float32)
    y_hat = jax.random.normal(k_g, (2, 1, 128), jnp.float32)

    all_params = [make_discriminator_p_params(100 + i) for i in range(len(MPD_PERIODS))]

    out = jax.block_until_ready(multi_period_discriminator_forward(y, y_hat, all_params))
    y_d_rs, y_d_gs, fmap_rs, fmap_gs = out

    # sanity checks on torch-matching shapes
    assert len(y_d_rs) == len(MPD_PERIODS) and len(fmap_gs) == len(MPD_PERIODS)
    assert all(len(f) == 5 for f in fmap_rs)
    assert all(l.shape[0] == 2 and l.ndim == 2 for l in y_d_rs + y_d_gs)
    assert fmap_rs[0][0].shape == (2, 32, 22, 2), fmap_rs[0][0].shape   # period=2 first conv
    assert y_d_rs[0].shape == (2, 2), y_d_rs[0].shape

    print("KERNEL_OK")
</pallas_src>

<mosaic_0001>
module attributes {stable_mosaic.version = 11 : i64} {
  func.func @_conv_fused_kernel(%arg0: i32, %arg1: i32, %arg2: memref<4x68x1xf32, #tpu.memory_space<vmem>>, %arg3: memref<5x32xbf16, #tpu.memory_space<vmem>>, %arg4: memref<1x32xf32, #tpu.memory_space<vmem>>, %arg5: memref<4x22x32xf32, #tpu.memory_space<vmem>>) attributes {dimension_semantics = [#tpu.dimension_semantics<parallel>, #tpu.dimension_semantics<parallel>], iteration_bounds = array<i64: 2, 1>, scalar_prefetch = 0 : i64, scratch_operands = 0 : i64, tpu.core_type = #tpu.core_type<tc>, window_params = [{transform_indices = @transform_0, window_bounds = array<i64: 4, 68, 1>}, {transform_indices = @transform_1, window_bounds = array<i64: 5, 32>}, {transform_indices = @transform_2, window_bounds = array<i64: 1, 32>}, {transform_indices = @transform_3, window_bounds = array<i64: 4, 22, 32>}]} {
    %c0 = arith.constant 0 : index
    %c0_0 = arith.constant 0 : index
    %c0_1 = arith.constant 0 : index
    %0 = tpu.strided_load %arg2[%c0, %c0_0, %c0_1] {strides = array<i32: 1, 3, 1>} : memref<4x68x1xf32, #tpu.memory_space<vmem>>, vector<4x22x1xf32>
    %1 = vector.shape_cast %0 : vector<4x22x1xf32> to vector<88x1xf32>
    %c0_2 = arith.constant 0 : index
    %c1 = arith.constant 1 : index
    %c0_3 = arith.constant 0 : index
    %2 = tpu.strided_load %arg2[%c0_2, %c1, %c0_3] {strides = array<i32: 1, 3, 1>} : memref<4x68x1xf32, #tpu.memory_space<vmem>>, vector<4x22x1xf32>
    %3 = vector.shape_cast %2 : vector<4x22x1xf32> to vector<88x1xf32>
    %c0_4 = arith.constant 0 : index
    %c2 = arith.constant 2 : index
    %c0_5 = arith.constant 0 : index
    %4 = tpu.strided_load %arg2[%c0_4, %c2, %c0_5] {strides = array<i32: 1, 3, 1>} : memref<4x68x1xf32, #tpu.memory_space<vmem>>, vector<4x22x1xf32>
    %5 = vector.shape_cast %4 : vector<4x22x1xf32> to vector<88x1xf32>
    %c0_6 = arith.constant 0 : index
    %c3 = arith.constant 3 : index
    %c0_7 = arith.constant 0 : index
    %6 = tpu.strided_load %arg2[%c0_6, %c3, %c0_7] {strides = array<i32: 1, 3, 1>} : memref<4x68x1xf32, #tpu.memory_space<vmem>>, vector<4x22x1xf32>
    %7 = vector.shape_cast %6 : vector<4x22x1xf32> to vector<88x1xf32>
    %c0_8 = arith.constant 0 : index
    %c4 = arith.constant 4 : index
    %c0_9 = arith.constant 0 : index
    %8 = tpu.strided_load %arg2[%c0_8, %c4, %c0_9] {strides = array<i32: 1, 3, 1>} : memref<4x68x1xf32, #tpu.memory_space<vmem>>, vector<4x22x1xf32>
    %9 = vector.shape_cast %8 : vector<4x22x1xf32> to vector<88x1xf32>
    %10 = tpu.concatenate %1, %3, %5, %7, %9 in 1 : vector<88x1xf32>, vector<88x1xf32>, vector<88x1xf32>, vector<88x1xf32>, vector<88x1xf32> -> vector<88x5xf32>
    %11 = arith.truncf %10 : vector<88x5xf32> to vector<88x5xbf16>
    %c0_10 = arith.constant 0 : index
    %c0_11 = arith.constant 0 : index
    %12 = vector.load %arg3[%c0_10, %c0_11] : memref<5x32xbf16, #tpu.memory_space<vmem>>, vector<5x32xbf16>
    %cst = arith.constant dense<0.000000e+00> : vector<88x32xf32>
    %13 = tpu.matmul %11, %12, %cst {dimension_numbers = #tpu.dot_dimension_numbers<[1], [0], [0], [1], [0, 0, 1, 1], [], []>} : vector<88x5xbf16>, vector<5x32xbf16>, vector<88x32xf32> -> vector<88x32xf32>
    %c0_12 = arith.constant 0 : index
    %c0_13 = arith.constant 0 : index
    %14 = vector.load %arg4[%c0_12, %c0_13] : memref<1x32xf32, #tpu.memory_space<vmem>>, vector<1x32xf32>
    %15 = vector.broadcast %14 : vector<1x32xf32> to vector<88x32xf32>
    %16 = arith.addf %13, %15 : vector<88x32xf32>
    %17 = vector.shape_cast %16 : vector<88x32xf32> to vector<4x22x32xf32>
    %c0_14 = arith.constant 0 : index
    %c0_15 = arith.constant 0 : index
    %c0_16 = arith.constant 0 : index
    %18 = vector.load %arg5[%c0_14, %c0_15, %c0_16] : memref<4x22x32xf32, #tpu.memory_space<vmem>>, vector<4x22x32xf32>
    tpu.vector_store %arg5[%c0_14, %c0_15, %c0_16], %17 {strides = array<i32>} : memref<4x22x32xf32, #tpu.memory_space<vmem>>, vector<4x22x32xf32>,
    return
  }
  func.func @transform_0(%arg0: i32, %arg1: i32) -> (i32, i32, i32) {
    %c0_i32 = arith.constant 0 : i32
    %c0_i32_0 = arith.constant 0 : i32
    %c0_i32_1 = arith.constant 0 : i32
    return %arg0, %c0_i32, %c0_i32_0 : i32, i32, i32
  }
  func.func @transform_1(%arg0: i32, %arg1: i32) -> (i32, i32) {
    %c0_i32 = arith.constant 0 : i32
    %c0_i32_0 = arith.constant 0 : i32
    return %c0_i32, %arg1 : i32, i32
  }
  func.func @transform_2(%arg0: i32, %arg1: i32) -> (i32, i32) {
    %c0_i32 = arith.constant 0 : i32
    %c0_i32_0 = arith.constant 0 : i32
    return %c0_i32, %arg1 : i32, i32
  }
  func.func @transform_3(%arg0: i32, %arg1: i32) -> (i32, i32, i32) {
    %c0_i32 = arith.constant 0 : i32
    %c0_i32_0 = arith.constant 0 : i32
    return %arg0, %c0_i32, %arg1 : i32, i32, i32
  }
}

</mosaic_0001>

<bundles_post_ra>
// kernel: tpu_custom_call.1
= control target key start
LH: loop header
LB: loop body
LE: loop exit
PB: predicated region body
PF: predicated region fallthrough
CT: control target
= control target key end

     0   :  { %8 = vsyncpa [#allocation3], 0  ;;  %s4533_s0 = inlined_call_operand.hbm [shape: f32[8,68,1], index: 0, kind: input, shape index: {}]   ;;  %s4534_s1 = inlined_call_operand.hbm [shape: bf16[5,32], index: 1, kind: input, shape index: {}]   ;;  %s4535_s2 = inlined_call_operand.hbm [shape: f32[1,32], index: 2, kind: input, shape index: {}]   ;;  %s4536_s3 = inlined_call_operand.hbm [shape: f32[8,22,32], index: 3, kind: output, shape index: {}]  }
   0x1   :  { %10 = vsyncpa [#allocation3 + $0x1], 0 }
   0x2   :  { %11 = vsyncpa [#allocation6], 0 }
   0x3   :  { %12 = vsyncpa [#allocation4], 0 }
   0x4   :  { %14 = vsyncpa [#allocation4 + $0x1], 0  ;;  %s3729_s12 = smov 0   ;;  %s3731_s13 = smov 0  }
   0x5   :  { %s3733_s14 = smov 0   ;;  %s3735_s15 = smov 0  }
   0x6   :  { %s3737_s16 = smov 0   ;;  %s3739_s17 = smov 0  }
   0x7 LB: > { %s3217_s18 = sadd.s32 4294967295, %s3693_s17   ;;  %s3218_s19 = sadd.s32 4294967294, %s3693_s17   ;;  %s3693_s17 = sphi %s3739_s17, %s20_s17   ;;  %s3689_s16 = sphi %s3737_s16, %s4562_s16   ;;  %s3685_s15 = sphi %s3735_s15, %s4561_s15   ;;  %s3681_s14 = sphi %s3733_s14, %s4560_s14   ;;  %s3677_s13 = sphi %s3731_s13, %s4559_s13   ;;  %s3673_s12 = sphi %s3729_s12, %s4558_s12  }
   0x8   : > { %s39_s20 = sadd.s32 1, %s3681_s14  ;;  %p46_p0 = scmp.ne.s32.totalorder %s3681_s14, %s3677_s13 }
   0x9   : > { %p47_p1 = scmp.eq.s32.totalorder %s3693_s17, 0  ;;  %p52_p2 = scmp.ne.s32.totalorder %s3677_s13, %s3673_s12 }
   0xa   : > { %p3767_p3 = scmp.eq.s32.totalorder %s3217_s18, 0  ;;  %p130_p4 = scmp.eq.s32.totalorder %s3217_s18, 1 }
   0xb   : > { %p3771_p5 = por %p47_p1, %p46_p0  ;;  %p136_p6 = scmp.eq.s32.totalorder %s3218_s19, 1 }
   0xc   : > { %s4543_s21 = scalar_select %p3767_p3, 1, 0 }
   0xd   : > { %p3777_p7 = por %p3767_p3, %p52_p2  ;;  %p3781_p8 = por %p130_p4, %p46_p0 }
   0xe   : > { %p3785_p9 = por %p136_p6, %p52_p2  ;;  %p3219_p10 = scmp.ge.s32.totalorder %s3693_s17, 1 }
   0xf   : > { %s4545_s23 = scalar_select %p3777_p7, 1, 0 }
  0x10   : > { %s4546_s24 = scalar_select %p3781_p8, 1, 0 }
  0x11   : > { %s4547_s25 = scalar_select %p3785_p9, 1, 0 }
  0x12   : > { %p143_p11 = scmp.lt.s32.totalorder %s3693_s17, 3  ;;  %s3695_s27 = smov [#allocation5]  }
  0x13   : > { %s158_s28 = sshll.u32 %s3695_s27, 4  ;;  %p3357_p1 = scmp.lt.s32.totalorder %s3693_s17, 2  ;;  %s159_s28 = int_to_ptr.vmem [resolvable:$true] %s158_s28 }
  0x14   : > { %p3792_p13 = pnand %p3219_p10, %p143_p11  ;;  %s3696_s30 = smov [#allocation7]  }
  0x15   : > { %p3801_p4 = pnand %p3357_p1, %p3771_p5  ;;  %s171_s4 = sshll.u32 %s3696_s30, 4  ;;  %s3811_s4 = int_to_ptr.vmem [resolvable:$true] %s171_s4 }
  0x16   : > { %s4548_s26 = scalar_select %p3792_p13, 1, 0 }
  0x17   : > { %p3340_p0 = pneg %p3792_p13  ;;  %s3521_s8 = scalar_lea.hbm %s4534_s1, 64 }
  0x18   : > { %s4549_s29 = scalar_select %p3801_p4, 1, 0 }
  0x19   : > { %p3807_p2 = pnand %p3340_p0, %p3767_p3  ;;  %p3522_p5 = scmp.ne.s32.totalorder %s4534_s1, %s3521_s8 }
  0x1a   : > { %p3528_p1 = scmp.lt.u32.totalorder %s3521_s8, %s4534_s1 }
  0x1b   : > { %p3523_p6 = pneg %p3807_p2 }
  0x1d   : > { %p3524_p10 = pnand %p3523_p6, %p3522_p5 }
  0x1f   : > { %p3525_p11 = pneg %p3524_p10 }
  0x21   : > { %p3530_p0 = pnand %p3528_p1, %p3525_p11 }
  0x23   : > { %3533 = shalt.err (!%p3530_p0)
}
  0x24   : > { %s3534_s19 = scalar_lea.vmem %s159_s28, 64  ;;  %p3542_p3 = scmp.lt.s32.totalorder %s159_s28, %s159_s28 }
  0x25   : > { %p3535_p12 = scmp.ne.s32.totalorder %s159_s28, %s3534_s19  ;;  %p3543_p7 = scmp.lt.s32.totalorder %s3534_s19, %s3534_s19 }
  0x27   : > { %p3537_p9 = pnand %p3535_p12, %p3523_p6  ;;  %p3544_p13 = por %p3543_p7, %p3542_p3 }
  0x29   : > { %p3538_p8 = pneg %p3537_p9 }
  0x2b   : > { %p3545_p4 = pnand %p3544_p13, %p3538_p8 }
  0x2d   : > { %3548 = shalt.err (!%p3545_p4)
}
  0x2e   : > { %3343 = dma.hbm_to_vmem [thread:$0]  (!%p3807_p2), %s4534_s1, 64, %s159_s28, [#allocation6]  }
  0x2f   : > { %s3549_s7 = scalar_lea.hbm %s4535_s2, 16 }
  0x30   : > { %p3550_p9 = scmp.ne.s32.totalorder %s4535_s2, %s3549_s7  ;;  %p3556_p8 = scmp.lt.u32.totalorder %s3549_s7, %s4535_s2 }
  0x32   : > { %p3552_p3 = pnand %p3550_p9, %p3523_p6 }
  0x34   : > { %p3553_p7 = pneg %p3552_p3 }
  0x36   : > { %p3558_p12 = pnand %p3556_p8, %p3553_p7 }
  0x38   : > { %3561 = shalt.err (!%p3558_p12)
}
  0x39   : > { %s3562_s28 = scalar_lea.vmem %s3811_s4, 16  ;;  %s3569_s18 = scalar_lea.vmem %s3811_s4, 32 }
  0x3a   : > { %p3563_p13 = scmp.ne.s32.totalorder %s3811_s4, %s3562_s28  ;;  %p3570_p10 = scmp.lt.s32.totalorder %s3811_s4, %s3811_s4 }
  0x3b   : > { %p3571_p11 = scmp.lt.s32.totalorder %s3569_s18, %s3562_s28 }
  0x3c   : > { %p3565_p4 = pnand %p3563_p13, %p3523_p6 }
  0x3d   : > { %p3572_p1 = por %p3571_p11, %p3570_p10 }
  0x3e   : > { %p3566_p5 = pneg %p3565_p4 }
  0x40   : > { %p3573_p0 = pnand %p3572_p1, %p3566_p5 }
  0x42   : > { %3576 = shalt.err (!%p3573_p0)
}
  0x43   : > { %3346 = dma.hbm_to_vmem [thread:$0]  (!%p3807_p2), %s4535_s2, 16, %s3811_s4, [#allocation6]  }
  0x44   : > { %s32_s27 = sadd.s32 1, %s3689_s16  ;;  %s182_s30 = sand.u32 1, %s3681_s14  }
  0x45   : > { %p34_p6 = scmp.ge.s32.totalorder %s32_s27, 2  ;;  %s3323_s6 = smul.u32 288, %s182_s30 }
  0x46   : > { %s3324_s5 = smul.u32 4608, %s3689_s16  ;;  %s3880_s18 = scalar_lea.sflag [#allocation3], %s182_s30 }
  0x47   : > { %s4564_s27 = smov (%p34_p6, %s32_s27), 0  ;;  %s186_s8 = scalar_lea.vmem [#allocation2], %s3323_s6 }
  0x48   : > { %s36_s7 = ssub.s32 %s3689_s16, %s4564_s27  ;;  %s194_s9 = sshll.u32 %s186_s8, 4  ;;  %s3873_s9 = int_to_ptr.vmem [resolvable:$true] %s194_s9 }
  0x49   : > { %p37_p9 = scmp.eq.s32.totalorder %s36_s7, 0  ;;  %s3871_s28 = scalar_lea.hbm %s4533_s0, %s3324_s5 }
  0x4a   : > { %s3577_s19 = scalar_lea.hbm %s3871_s28, 4608  ;;  %p4551_p3 = scmp.ne.s32.totalorder %s4549_s29, 0 }
  0x4b   : > { %s3878_s4 = scalar_select %p37_p9, %s3681_s14, %s39_s20  }
  0x4c   : > { %p3578_p2 = scmp.ne.s32.totalorder %s3871_s28, %s3577_s19  ;;  %p3579_p7 = pneg %p4551_p3 }
  0x4d   : > { %s3582_s5 = scalar_lea.hbm %s4533_s0, 9216  ;;  %p3583_p13 = scmp.lt.u32.totalorder %s3871_s28, %s4533_s0 }
  0x4e   : > { %p3580_p8 = pnand %p3579_p7, %p3578_p2  ;;  %p3584_p4 = scmp.lt.u32.totalorder %s3582_s5, %s3577_s19 }
  0x4f   : > { %p3586_p10 = scmp.lt.u32.totalorder %s3577_s19, %s3871_s28 }
  0x50   : > { %p3581_p12 = pneg %p3580_p8  ;;  %p3585_p5 = por %p3584_p4, %p3583_p13 }
  0x52   : > { %p3587_p11 = por %p3586_p10, %p3585_p5 }
  0x54   : > { %p3588_p1 = pnand %p3587_p11, %p3581_p12 }
  0x56   : > { %3591 = shalt.err (!%p3588_p1)
}
  0x57   : > { %s3592_s20 = scalar_lea.vmem %s3873_s9, 4608  ;;  %s3697_s30 = smov [#allocation2]  }
  0x58   : > { %p3593_p0 = scmp.ne.s32.totalorder %s3873_s9, %s3592_s20  ;;  %s3597_s10 = sshll.u32 %s3697_s30, 4  ;;  %s3598_s10 = int_to_ptr.vmem [resolvable:$false] %s3597_s10 }
  0x59   : > { %s3599_s11 = scalar_lea.vmem %s3598_s10, 9216  ;;  %p3600_p2 = scmp.lt.s32.totalorder %s3873_s9, %s3598_s10 }
  0x5a   : > { %p3595_p6 = pnand %p3593_p0, %p3579_p7  ;;  %p3601_p8 = scmp.lt.s32.totalorder %s3599_s11, %s3592_s20 }
  0x5c   : > { %p3596_p9 = pneg %p3595_p6  ;;  %p3602_p13 = por %p3601_p8, %p3600_p2 }
  0x5e   : > { %p3603_p4 = pnand %p3602_p13, %p3596_p9 }
  0x60   : > { %3606 = shalt.err (!%p3603_p4)
}
  0x61   : > { %s3698_s19 = smov 128   ;;  %s3699_s22 = smov 8  }
  0x62   : > { %3350 = dma.hbm_to_vmem [thread:$0]  (!%p4551_p3), %s3871_s28, 4608, %s3873_s9, %s3880_s18, %s3698_s19, %s3698_s19, %s3699_s22  }
  0x63   : > { %p4552_p7 = scmp.ne.s32.totalorder %s4548_s26, 0 }
  0x64   : > { %s3911_s6 = sand.u32 (!%p4552_p7), 1, %s3677_s13   ;;  %p4553_p12 = scmp.ne.s32.totalorder (!%p4552_p7), %s4545_s23, 0 }
  0x65   : > { %206 = sbr.rel (%p4552_p7) target bundleno = 610 (0x262), region = 32  ;;  %s209_s7 = scalar_lea.sflag (!%p4552_p7), [#allocation3], %s3911_s6 }
  0x66   : > { %s3325_s5 = smul.u32 (!%p4552_p7), 288, %s3911_s6 }
  0x68   : > { %s3915_s8 = scalar_lea.vmem (!%p4552_p7), [#allocation2], %s3325_s5 }
  0x6c   : > { %3660 = dma.done.wait (%p4553_p12), %s209_s7, 4608  }
  0x6d   : > { %3662 = vsyncadd (%p4553_p12), %s209_s7, 4294962688  ;;  %p4554_p3 = scmp.ne.s32.totalorder %s4543_s21, 0 }
  0x6f   : > { %3664 = dma.done.wait (%p4554_p3), [#allocation6], 80  }
  0x70   : > { %3666 = vsyncadd (%p4554_p3), [#allocation6], 4294967216  ;;  %v285_v0 = vlaneseq  ;;  %v3700_v1 = vmov 1983009808   ;;  %v3256_v6 = vld [vmem:[%s3915_s8 + $0x62] ss:$3 sm:$0xff] }
  0x71   : > { %v283_v2 = vunpack.c.l.s4 %v3700_v1  ;;  %v3257_v7 = vld [vmem:[%s3915_s8 + $0x7a] ss:$3 sm:$0x3f]  ;;  %v3258_v8 = vld [vmem:[%s3915_s8 + $0x92] ss:$3 sm:$0xff]  ;;  %v820_v9 = vcombine.high %v3256_v6, %v3256_v6  ;;  %s3701_s21 = smov 2  }
  0x72   : > { %v286_v3 = vshrl.u32 %v285_v0, 7  ;;  %v837_v11 = vcombine.high %v3257_v7, %v3257_v7  ;;  %v3244_v13 = vld [vmem:[%s3915_s8 + $0x61] ss:$3 sm:$0xff]  ;;  %v853_v14 = vcombine.high %v3258_v8, %v3258_v8  ;;  %v3245_v16 = vld [vmem:[%s3915_s8 + $0x79] ss:$3 sm:$0x3f] }
  0x73   : > { %v284_v4 = vunpack.c.0.s8 %v283_v2  ;;  %v584_v17 = vcombine.high %v3244_v13, %v3244_v13  ;;  %v601_v26 = vcombine.high %v3245_v16, %v3245_v16  ;;  %v3246_v30 = vld [vmem:[%s3915_s8 + $0x91] ss:$3 sm:$0xff]  ;;  %v3259_v36 = vld [vmem:[%s3915_s8 + $0xaa] ss:$3 sm:$0xff]  ;;  %v3247_v58 = vld [vmem:[%s3915_s8 + $0xa9] ss:$3 sm:$0xff] }
  0x74   : > { %v617_v35 = vcombine.high %v3246_v30, %v3246_v30  ;;  %v3957_v47 = vld [vmem:[%s3915_s8 + $0xc2] ss:$3 sm:$0x3f]  ;;  %v870_v49 = vcombine.high %v3259_v36, %v3259_v36  ;;  %s3702_s23 = smov 1   ;;  %s3703_s26 = smov 3   ;;  %vm2584_vm0 = vcmask 1041408  }
  0x75   : > { %v3925_v5 = vsub.s32 %v284_v4, %v286_v3  ;;  %s3704_s29 = smov 4   ;;  %vm2585_vm1 = vcmask 1042432   ;;  %vm2503_vm2 = vcmask 7168   ;;  %vm2515_vm3 = vcmask 15360   ;;  %s3326_s9 = smul.u32 96, %s3911_s6 }
  0x76   : > { %vm2527_vm4 = vcmask 23552   ;;  %vm2539_vm5 = vcmask 31744   ;;  %vm2565_vm6 = vcmask 39936   ;;  %vm3081_vm7 = vcmask 261120   ;;  %s3327_s18 = smul.u32 1536, %s3685_s15  ;;  %s3096_s15 = scalar_lea.sflag [#allocation4], %s3911_s6 }
  0x77   : > { %v3931_v10 = vrot.slane %v3256_v6, %v3925_v5  ;;  %v844_v12 = vrot.slane %v3257_v7, %v3925_v5  ;;  %v860_v15 = vrot.slane %v3258_v8, %v3925_v5  ;;  %v3938_v18 = vrot.slane %v3244_v13, %v3925_v5  ;;  %v3971_v7 = vld [vmem:[%s3915_s8 + $0xc1] ss:$3 sm:$0x3f]  ;;  %s4409_s28 = scalar_lea.vmem [#allocation8], %s3326_s9  ;;  %p4555_p10 = scmp.ne.s32.totalorder %s4546_s24, 0 }
  0x78   : > { %v834_v19 = vrot.slane %v820_v9, %v3925_v5  ;;  %v851_v21 = vrot.slane %v837_v11, %v3925_v5  ;;  %v598_v24 = vrot.slane %v584_v17, %v3925_v5  ;;  %v608_v31 = vrot.slane %v3245_v16, %v3925_v5  ;;  %s3111_s20 = sshll.u32 %s4409_s28, 4  ;;  %s4480_s11 = scalar_lea.hbm %s4536_s3, %s3327_s18  ;;  %s4482_s20 = int_to_ptr.vmem [resolvable:$true] %s3111_s20 }
  0x79   : > { %v835_v20 = vcombine.high %v3931_v10, %v3931_v10  ;;  %v852_v22 = vcombine.high %v844_v12, %v844_v12  ;;  %v868_v23 = vcombine.high %v860_v15, %v860_v15  ;;  %v599_v25 = vcombine.high %v3938_v18, %v3938_v18  ;;  %s3607_s19 = scalar_lea.vmem %s4482_s20, 1536  ;;  %s3706_s22 = smov [#allocation8]  }
  0x7a   : > { %v836_v27 = vcombine.high %v834_v19, %v834_v19  ;;  %v600_v33 = vcombine.high %v598_v24, %v598_v24  ;;  %v615_v34 = vrot.slane %v601_v26, %v3925_v5  ;;  %v616_v40 = vcombine.high %v608_v31, %v608_v31  ;;  %p3608_p5 = scmp.ne.s32.totalorder %s4482_s20, %s3607_s19  ;;  %s3611_s5 = sshll.u32 %s3706_s22, 4  ;;  %s3612_s5 = int_to_ptr.vmem [resolvable:$false] %s3611_s5 }
  0x7b   : > { %v1911_v28 = vcombine.low %v835_v20, %v834_v19  ;;  %v1928_v29 = vcombine.low %v852_v22, %v851_v21  ;;  %v1929_v32 = vcombine.low %v860_v15, %v868_v23  ;;  %v624_v42 = vrot.slane %v3246_v30, %v3925_v5  ;;  %v3270_v23 = vld [vmem:[%s3915_s8 + $0x93] ss:$3 sm:$0xff]  ;;  %s3613_s7 = scalar_lea.vmem %s3612_s5, 3072  ;;  %p3614_p0 = scmp.lt.s32.totalorder %s4482_s20, %s3612_s5 }
  0x7c   : > { %v1912_v37 = vcombine.low %v836_v27, %v844_v12  ;;  %v1691_v43 = vcombine.low %v599_v25, %v598_v24  ;;  %v1692_v44 = vcombine.low %v600_v33, %v608_v31  ;;  %v1708_v46 = vcombine.low %v616_v40, %v615_v34  ;;  %v3271_v24 = vld [vmem:[%s3915_s8 + $0xab] ss:$3 sm:$0xff]  ;;  %p3609_p11 = pnand %p3608_p5, %p4555_p10  ;;  %p3615_p6 = scmp.lt.s32.totalorder %s3613_s7, %s3607_s19 }
  0x7d   : > { %v1919_v38 = vrot.slane %v1911_v28, %v3925_v5  ;;  %v1936_v39 = vrot.slane %v1928_v29, %v3925_v5  ;;  %v1943_v41 = vrot.slane %v1929_v32, %v3925_v5  ;;  %v867_v48 = vrot.slane %v853_v14, %v3925_v5  ;;  %v3985_v29 = vld [vmem:[%s3915_s8 + $0xc3] ss:$3 sm:$0x3f] }
  0x7e   : > { %v1926_v45 = vrot.slane %v1912_v37, %v3925_v5  ;;  %v632_v51 = vcombine.high %v624_v42, %v624_v42  ;;  %v1699_v52 = vrot.slane %v1691_v43, %v3925_v5  ;;  %v1706_v53 = vrot.slane %v1692_v44, %v3925_v5  ;;  %p3610_p1 = pneg %p3609_p11  ;;  %p3616_p9 = por %p3615_p6, %p3614_p0 }
  0x7f   : > { %v1944_v50 = vcombine.low %v1936_v39, %v1943_v41  ;;  %v1716_v55 = vrot.slane %v1708_v46, %v3925_v5  ;;  %v869_v56 = vcombine.high %v867_v48, %v867_v48  ;;  %v877_v57 = vrot.slane %v3259_v36, %v3925_v5 }
  0x80   : > { %v1927_v54 = vcombine.low %v1919_v38, %v1926_v45  ;;  %v1707_v59 = vcombine.low %v1699_v52, %v1706_v53  ;;  %v1709_v60 = vcombine.low %v624_v42, %v632_v51  ;;  %v884_v61 = vrot.slane %v870_v49, %v3925_v5  ;;  %v3268_v42 = vld [vmem:[%s3915_s8 + $0x63] ss:$3 sm:$0xff]  ;;  %p3617_p2 = pnand %p3616_p9, %p3610_p1 }
  0x81   : > { %v894_v62 = vrot.slane %v3957_v47, %v3925_v5  ;;  %v885_v0 = vcombine.high %v877_v57, %v877_v57  ;;  %v1945_v1 = vcombine.low %v867_v48, %v869_v56  ;;  %v631_v2 = vrot.slane %v617_v35, %v3925_v5  ;;  %v3269_v48 = vld [vmem:[%s3915_s8 + $0x7b] ss:$3 sm:$0x3f] }
  0x82   : > { %v3431_v63 = vpack.i.bf16 %v1944_v50, %v1927_v54  ;;  %v1723_v3 = vrot.slane %v1709_v60, %v3925_v5  ;;  %v886_v4 = vcombine.high %v884_v61, %v884_v61  ;;  %v634_v8 = vcombine.high %v3247_v58, %v3247_v58 }
  0x83   : > { %v902_v6 = vcombine.high %v894_v62, %v894_v62  ;;  %v1946_v9 = vcombine.low %v877_v57, %v885_v0  ;;  %v1953_v11 = vrot.slane %v1945_v1, %v3925_v5  ;;  %v633_v12 = vcombine.high %v631_v2, %v631_v2  ;;  %v3282_v1 = vld [vmem:[%s3915_s8 + $0x94] ss:$3 sm:$0xff] }
  0x84   : > { %3432 = vrot.lane.b32.xlu1 %v3431_v63, %s3701_s21  ;;  %v641_v13 = vrot.slane %v3247_v58, %v3925_v5  ;;  %v1724_v14 = vcombine.low %v1716_v55, %v1723_v3  ;;  %v1962_v15 = vcombine.low %v884_v61, %v886_v4  ;;  %v648_v17 = vrot.slane %v634_v8, %v3925_v5  ;;  %v3283_v8 = vld [vmem:[%s3915_s8 + $0xac] ss:$3 sm:$0xff] }
  0x85   : > { %v1963_v16 = vcombine.low %v894_v62, %v902_v6  ;;  %v1960_v19 = vrot.slane %v1946_v9, %v3925_v5  ;;  %v658_v21 = vrot.slane %v3971_v7, %v3925_v5  ;;  %v1725_v22 = vcombine.low %v631_v2, %v633_v12 }
  0x86   : > { %v649_v20 = vcombine.high %v641_v13, %v641_v13  ;;  %v3421_v25 = vpack.i.bf16 %v1724_v14, %v1707_v59  ;;  %v1970_v26 = vrot.slane %v1962_v15, %v3925_v5  ;;  %v650_v28 = vcombine.high %v648_v17, %v648_v17 }
  0x87   : > { %v1977_v27 = vrot.slane %v1963_v16, %v3925_v5  ;;  %v1961_v30 = vcombine.low %v1953_v11, %v1960_v19  ;;  %v666_v31 = vcombine.high %v658_v21, %v658_v21  ;;  %v1733_v33 = vrot.slane %v1725_v22, %v3925_v5  ;;  %v4017_v22 = vld [vmem:[%s3915_s8 + $0xc4] ss:$3 sm:$0x3f] }
  0x88   : > { %v1726_v32 = vcombine.low %v641_v13, %v649_v20  ;;  %3422 = vrot.lane.b32.xlu0 %v3421_v25, %s3702_s23  ;;  %v1742_v35 = vcombine.low %v648_v17, %v650_v28  ;;  %v1089_v36 = vcombine.high %v3270_v23, %v3270_v23  ;;  %v1106_v37 = vcombine.high %v3271_v24, %v3271_v24 }
  0x89   : > { %v1978_v34 = vcombine.low %v1970_v26, %v1977_v27  ;;  %v1743_v39 = vcombine.low %v658_v21, %v666_v31  ;;  %v1113_v40 = vrot.slane %v3271_v24, %v3925_v5  ;;  %v1130_v41 = vrot.slane %v3985_v29, %v3925_v5 }
  0x8a   : > { %v1740_v38 = vrot.slane %v1726_v32, %v3925_v5  ;;  %v1750_v44 = vrot.slane %v1742_v35, %v3925_v5  ;;  %v1103_v45 = vrot.slane %v1089_v36, %v3925_v5  ;;  %v1120_v46 = vrot.slane %v1106_v37, %v3925_v5 }
  0x8b   : > { %v3436_v43 = vpack.i.bf16 %v1978_v34, %v1961_v30  ;;  %v1757_v50 = vrot.slane %v1743_v39, %v3925_v5  ;;  %v1121_v51 = vcombine.high %v1113_v40, %v1113_v40  ;;  %v1138_v52 = vcombine.high %v1130_v41, %v1130_v41  ;;  %v3280_v30 = vld [vmem:[%s3915_s8 + $0x64] ss:$3 sm:$0xff] }
  0x8c   : > { %v1741_v49 = vcombine.low %v1733_v33, %v1740_v38  ;;  %v1105_v53 = vcombine.high %v1103_v45, %v1103_v45  ;;  %v1122_v54 = vcombine.high %v1120_v46, %v1120_v46  ;;  %v1056_v55 = vcombine.high %v3268_v42, %v3268_v42  ;;  %v3281_v38 = vld [vmem:[%s3915_s8 + $0x7c] ss:$3 sm:$0x3f] }
  0x8d   : > { %3437 = vrot.lane.b32.xlu1 %v3436_v43, %s3701_s21  ;;  %v4001_v56 = vrot.slane %v3268_v42, %v3925_v5  ;;  %v1758_v57 = vcombine.low %v1750_v44, %v1757_v50  ;;  %v2166_v58 = vcombine.low %v1113_v40, %v1121_v51  ;;  %v2183_v59 = vcombine.low %v1130_v41, %v1138_v52 }
  0x8e   : > { %v1073_v60 = vcombine.high %v3269_v48, %v3269_v48  ;;  %v2165_v61 = vcombine.low %v1103_v45, %v1105_v53  ;;  %v2182_v62 = vcombine.low %v1120_v46, %v1122_v54  ;;  %v1070_v63 = vrot.slane %v1056_v55, %v3925_v5 }
  0x8f   : > { %v1071_v0 = vcombine.high %v4001_v56, %v4001_v56  ;;  %v3426_v2 = vpack.i.bf16 %v1758_v57, %v1741_v49  ;;  %v2180_v3 = vrot.slane %v2166_v58, %v3925_v5  ;;  %v2197_v4 = vrot.slane %v2183_v59, %v3925_v5 }
  0x90   : > { %v1080_v6 = vrot.slane %v3269_v48, %v3925_v5  ;;  %v2173_v9 = vrot.slane %v2165_v61, %v3925_v5  ;;  %v2190_v11 = vrot.slane %v2182_v62, %v3925_v5  ;;  %v1072_v12 = vcombine.high %v1070_v63, %v1070_v63  ;;  %v3249_v61 = vld [vmem:[%s3915_s8 + $0xd9] ss:$3 sm:$0xff] }
  0x91   : > { %v1087_v13 = vrot.slane %v1073_v60, %v3925_v5  ;;  %3427 = vrot.lane.b32.xlu0 %v3426_v2, %s3702_s23  ;;  %v1096_v15 = vrot.slane %v3270_v23, %v3925_v5  ;;  %v2131_v16 = vcombine.low %v1071_v0, %v1070_v63  ;;  %v1325_v17 = vcombine.high %v3282_v1, %v3282_v1 }
  0x92   : > { %v1088_v14 = vcombine.high %v1080_v6, %v1080_v6  ;;  %v2181_v19 = vcombine.low %v2173_v9, %v2180_v3  ;;  %v2198_v20 = vcombine.low %v2190_v11, %v2197_v4  ;;  %v2132_v21 = vcombine.low %v1072_v12, %v1080_v6  ;;  %v3250_v12 = vld [vmem:[%s3915_s8 + $0xf1] ss:$3 sm:$0xff] }
  0x93   : > { %v1342_v24 = vcombine.high %v3283_v8, %v3283_v8  ;;  %v1104_v25 = vcombine.high %v1096_v15, %v1096_v15  ;;  %v2139_v26 = vrot.slane %v2131_v16, %v3925_v5  ;;  %v1339_v28 = vrot.slane %v1325_v17, %v3925_v5 }
  0x94   : > { %v2148_v27 = vcombine.low %v1088_v14, %v1087_v13  ;;  %v3446_v31 = vpack.i.bf16 %v2198_v20, %v2181_v19  ;;  %v2146_v32 = vrot.slane %v2132_v21, %v3925_v5  ;;  %v1349_v23 = vrot.slane %v3283_v8, %v3925_v5 }
  0x95   : > { %v1356_v33 = vrot.slane %v1342_v24, %v3925_v5  ;;  %v2149_v34 = vcombine.low %v1096_v15, %v1104_v25  ;;  %v1341_v36 = vcombine.high %v1339_v28, %v1339_v28  ;;  %v1366_v37 = vrot.slane %v4017_v22, %v3925_v5  ;;  %v3240_v25 = vld [vmem:[%s3915_s8 + $0x1] ss:$3 sm:$0xff] }
  0x96   : > { %v2156_v35 = vrot.slane %v2148_v27, %v3925_v5  ;;  %3447 = vrot.lane.b32.xlu1 %v3446_v31, %s3703_s26  ;;  %v2147_v39 = vcombine.low %v2139_v26, %v2146_v32  ;;  %v1357_v40 = vcombine.high %v1349_v23, %v1349_v23  ;;  %v1292_v42 = vcombine.high %v3280_v30, %v3280_v30 }
  0x97   : > { %v1358_v41 = vcombine.high %v1356_v33, %v1356_v33  ;;  %v2163_v43 = vrot.slane %v2149_v34, %v3925_v5  ;;  %v1374_v44 = vcombine.high %v1366_v37, %v1366_v37  ;;  %v2385_v45 = vcombine.low %v1339_v28, %v1341_v36 }
  0x98   : > { %v4032_v46 = vrot.slane %v3280_v30, %v3925_v5  ;;  %v2386_v48 = vcombine.low %v1349_v23, %v1357_v40  ;;  %v1306_v50 = vrot.slane %v1292_v42, %v3925_v5  ;;  %v1309_v51 = vcombine.high %v3281_v38, %v3281_v38 }
  0x99   : > { %v2402_v49 = vcombine.low %v1356_v33, %v1358_v41  ;;  %v2164_v52 = vcombine.low %v2156_v35, %v2163_v43  ;;  %v2393_v53 = vrot.slane %v2385_v45, %v3925_v5  ;;  %v2403_v54 = vcombine.low %v1366_v37, %v1374_v44  ;;  %v3241_v33 = vld [vmem:[%s3915_s8 + $0x19] ss:$3 sm:$0xff] }
  0x9a   : > { %v1307_v55 = vcombine.high %v4032_v46, %v4032_v46  ;;  %v2400_v57 = vrot.slane %v2386_v48, %v3925_v5  ;;  %v1308_v59 = vcombine.high %v1306_v50, %v1306_v50  ;;  %v1316_v60 = vrot.slane %v3281_v38, %v3925_v5  ;;  %v3251_v48 = vld [vmem:[%s3915_s8 + $0x109] ss:$3 sm:$0x3f] }
  0x9b   : > { %v2410_v58 = vrot.slane %v2402_v49, %v3925_v5  ;;  %v3441_v62 = vpack.i.bf16 %v2164_v52, %v2147_v39  ;;  %v2417_v63 = vrot.slane %v2403_v54, %v3925_v5  ;;  %v1323_v0 = vrot.slane %v1309_v51, %v3925_v5 }
  0x9c   : > { %v1332_v2 = vrot.slane %v3282_v1, %v3925_v5  ;;  %v2401_v3 = vcombine.low %v2393_v53, %v2400_v57  ;;  %v1324_v4 = vcombine.high %v1316_v60, %v1316_v60  ;;  %v2351_v6 = vcombine.low %v1307_v55, %v1306_v50 }
  0x9d   : > { %v2352_v8 = vcombine.low %v1308_v59, %v1316_v60  ;;  %3442 = vrot.lane.b32.xlu0 %v3441_v62, %s3703_s26  ;;  %v2418_v9 = vcombine.low %v2410_v58, %v2417_v63  ;;  %v651_v13 = vcombine.high %v3971_v7, %v3971_v7  ;;  %v667_v14 = vcombine.high %v3249_v61, %v3249_v61  ;;  %v3242_v58 = vld [vmem:[%s3915_s8 + $0x31] ss:$3 sm:$0x3f] }
  0x9e   : > { %v1340_v11 = vcombine.high %v1332_v2, %v1332_v2  ;;  %v2359_v15 = vrot.slane %v2351_v6, %v3925_v5  ;;  %v2368_v17 = vcombine.low %v1324_v4, %v1323_v0  ;;  %v674_v1 = vrot.slane %v3249_v61, %v3925_v5 }
  0x9f   : > { %v2366_v16 = vrot.slane %v2352_v8, %v3925_v5  ;;  %v3456_v19 = vpack.i.bf16 %v2418_v9, %v2401_v3  ;;  %v665_v21 = vrot.slane %v651_v13, %v3925_v5  ;;  %v681_v24 = vrot.slane %v667_v14, %v3925_v5 }
  0xa0   : > { %v2369_v20 = vcombine.low %v1332_v2, %v1340_v11  ;;  %v2376_v27 = vrot.slane %v2368_v17, %v3925_v5  ;;  %v682_v7 = vcombine.high %v674_v1, %v674_v1  ;;  %v684_v28 = vcombine.high %v3250_v12, %v3250_v12 }
  0xa1   : > { %v2367_v26 = vcombine.low %v2359_v15, %v2366_v16  ;;  %3457 = vrot.lane.b32.xlu1 %v3456_v19, %s3704_s29  ;;  %v683_v31 = vcombine.high %v681_v24, %v681_v24  ;;  %v691_v32 = vrot.slane %v3250_v12, %v3925_v5  ;;  %v1759_v23 = vcombine.low %v665_v21, %v674_v1  ;;  %v3243_v15 = vld [vmem:[%s3915_s8 + $0x49] ss:$3 sm:$0xff] }
  0xa2   : > { %v2383_v30 = vrot.slane %v2369_v20, %v3925_v5  ;;  %v698_v34 = vrot.slane %v684_v28, %v3925_v5  ;;  %v1760_v35 = vcombine.low %v682_v7, %v681_v24  ;;  %v517_v36 = vcombine.high %v3240_v25, %v3240_v25  ;;  %v3261_v20 = vld [vmem:[%s3915_s8 + $0xda] ss:$3 sm:$0xff] }
  0xa3   : > { %v524_v37 = vrot.slane %v3240_v25, %v3925_v5  ;;  %v699_v39 = vcombine.high %v691_v32, %v691_v32  ;;  %v1767_v40 = vrot.slane %v1759_v23, %v3925_v5  ;;  %v1776_v41 = vcombine.low %v683_v31, %v691_v32 }
  0xa4   : > { %v2384_v38 = vcombine.low %v2376_v27, %v2383_v30  ;;  %v1774_v42 = vrot.slane %v1760_v35, %v3925_v5  ;;  %v531_v43 = vrot.slane %v517_v36, %v3925_v5  ;;  %v534_v45 = vcombine.high %v3241_v33, %v3241_v33 }
  0xa5   : > { %v532_v44 = vcombine.high %v524_v37, %v524_v37  ;;  %v1777_v50 = vcombine.low %v699_v39, %v698_v34  ;;  %v1784_v51 = vrot.slane %v1776_v41, %v3925_v5  ;;  %v541_v52 = vrot.slane %v3241_v33, %v3925_v5 }
  0xa6   : > { %v3451_v49 = vpack.i.bf16 %v2384_v38, %v2367_v26  ;;  %v1775_v53 = vcombine.low %v1767_v40, %v1774_v42  ;;  %v533_v54 = vcombine.high %v531_v43, %v531_v43  ;;  %v548_v55 = vrot.slane %v534_v45, %v3925_v5  ;;  %v3262_v38 = vld [vmem:[%s3915_s8 + $0xf2] ss:$3 sm:$0xff] }
  0xa7   : > { %v1623_v57 = vcombine.low %v524_v37, %v532_v44  ;;  %v1791_v59 = vrot.slane %v1777_v50, %v3925_v5  ;;  %v549_v60 = vcombine.high %v541_v52, %v541_v52  ;;  %v700_v61 = vcombine.high %v698_v34, %v698_v34 }
  0xa8   : > { %3452 = vrot.lane.b32.xlu0 %v3451_v49, %s3704_s29  ;;  %v701_v62 = vcombine.high %v3251_v48, %v3251_v48  ;;  %v550_v63 = vcombine.high %v548_v55, %v548_v55  ;;  %v1624_v0 = vcombine.low %v531_v43, %v533_v54  ;;  %v708_v3 = vrot.slane %v3251_v48, %v3925_v5  ;;  %v3252_v48 = vld [vmem:[%s3915_s8 + $0x2] ss:$3 sm:$0xff] }
  0xa9   : > { %v1631_v2 = vrot.slane %v1623_v57, %v3925_v5  ;;  %v1792_v4 = vcombine.low %v1784_v51, %v1791_v59  ;;  %v1640_v6 = vcombine.low %v541_v52, %v549_v60  ;;  %v551_v9 = vcombine.high %v3242_v58, %v3242_v58  ;;  %v3253_v57 = vld [vmem:[%s3915_s8 + $0x1a] ss:$3 sm:$0xff] }
  0xaa   : > { %v715_v8 = vrot.slane %v701_v62, %v3925_v5  ;;  %v1638_v11 = vrot.slane %v1624_v0, %v3925_v5  ;;  %v1641_v12 = vcombine.low %v548_v55, %v550_v63  ;;  %v716_v13 = vcombine.high %v708_v3, %v708_v3 }
  0xab   : > { %v1793_v14 = vcombine.low %v700_v61, %v708_v3  ;;  %v3466_v16 = vpack.i.bf16 %v1792_v4, %v1775_v53  ;;  %v1648_v17 = vrot.slane %v1640_v6, %v3925_v5  ;;  %v558_v1 = vrot.slane %v3242_v58, %v3925_v5 }
  0xac   : > { %v565_v19 = vrot.slane %v551_v9, %v3925_v5  ;;  %v1639_v21 = vcombine.low %v1631_v2, %v1638_v11  ;;  %v1655_v24 = vrot.slane %v1641_v12, %v3925_v5  ;;  %v1794_v25 = vcombine.low %v716_v13, %v715_v8  ;;  %v3263_v13 = vld [vmem:[%s3915_s8 + $0x10a] ss:$3 sm:$0x3f] }
  0xad   : > { %v1801_v26 = vrot.slane %v1793_v14, %v3925_v5  ;;  %3467 = vrot.lane.b32.xlu1 %v3466_v16, %s3702_s23  ;;  %v566_v27 = vcombine.high %v558_v1, %v558_v1  ;;  %v567_v7 = vcombine.high %v3243_v15, %v3243_v15  ;;  %v574_v28 = vrot.slane %v3243_v15, %v3925_v5 }
  0xae   : > { %v887_v30 = vcombine.high %v3957_v47, %v3957_v47  ;;  %v1656_v31 = vcombine.low %v1648_v17, %v1655_v24  ;;  %v1808_v32 = vrot.slane %v1794_v25, %v3925_v5  ;;  %v903_v23 = vcombine.high %v3261_v20, %v3261_v20 }
  0xaf   : > { %v910_v33 = vrot.slane %v3261_v20, %v3925_v5  ;;  %v581_v34 = vrot.slane %v567_v7, %v3925_v5  ;;  %v582_v35 = vcombine.high %v574_v28, %v574_v28  ;;  %v1657_v36 = vcombine.low %v558_v1, %v566_v27  ;;  %v3254_v1 = vld [vmem:[%s3915_s8 + $0x32] ss:$3 sm:$0x3f] }
  0xb0   : > { %v1658_v37 = vcombine.low %v565_v19, %v574_v28  ;;  %v3461_v39 = vpack.i.bf16 %v1656_v31, %v1639_v21  ;;  %v1809_v40 = vcombine.low %v1801_v26, %v1808_v32  ;;  %v901_v41 = vrot.slane %v887_v30, %v3925_v5 }
  0xb1   : > { %v917_v47 = vrot.slane %v903_v23, %v3925_v5  ;;  %v583_v42 = vcombine.high %v581_v34, %v581_v34  ;;  %v1665_v43 = vrot.slane %v1657_v36, %v3925_v5  ;;  %v1674_v45 = vcombine.low %v582_v35, %v581_v34  ;;  %v3255_v36 = vld [vmem:[%s3915_s8 + $0x4a] ss:$3 sm:$0xff] }
  0xb2   : > { %v1672_v44 = vrot.slane %v1658_v37, %v3925_v5  ;;  %3462 = vrot.lane.b32.xlu0 %v3461_v39, %s3702_s23  ;;  %1830 = vrot.lane.b32.xlu1 %v1809_v40, %s3702_s23  ;;  %v918_v49 = vcombine.high %v910_v33, %v910_v33  ;;  %v920_v51 = vcombine.high %v3262_v38, %v3262_v38  ;;  %vm3084_vm8 = vcmask 259072  }
  0xb3   : > { %v919_v50 = vcombine.high %v917_v47, %v917_v47  ;;  %v1675_v53 = vcombine.low %v583_v42, %v3938_v18  ;;  %v1682_v54 = vrot.slane %v1674_v45, %v3925_v5  ;;  %v927_v55 = vrot.slane %v3262_v38, %v3925_v5 }
  0xb4   : > { %v1673_v52 = vcombine.low %v1665_v43, %v1672_v44  ;;  %v934_v58 = vrot.slane %v920_v51, %v3925_v5  ;;  %v1979_v59 = vcombine.low %v901_v41, %v910_v33  ;;  %v1980_v60 = vcombine.low %v918_v49, %v917_v47  ;;  %v3273_v41 = vld [vmem:[%s3915_s8 + $0xdb] ss:$3 sm:$0xff] }
  0xb5   : > { %v753_v61 = vcombine.high %v3252_v48, %v3252_v48  ;;  %v1689_v62 = vrot.slane %v1675_v53, %v3925_v5  ;;  %v935_v63 = vcombine.high %v927_v55, %v927_v55  ;;  %v1996_v0 = vcombine.low %v919_v50, %v927_v55 }
  0xb6   : > { %v760_v2 = vrot.slane %v3252_v48, %v3925_v5  ;;  %v1987_v18 = vrot.slane %v1979_v59, %v3925_v5  ;;  %v1994_v3 = vrot.slane %v1980_v60, %v3925_v5  ;;  %v770_v6 = vcombine.high %v3253_v57, %v3253_v57  ;;  %v3274_v59 = vld [vmem:[%s3915_s8 + $0xf3] ss:$3 sm:$0xff] }
  0xb7   : > { %v767_v4 = vrot.slane %v753_v61, %v3925_v5  ;;  %v1690_v8 = vcombine.low %v1682_v54, %v1689_v62  ;;  %v1997_v9 = vcombine.low %v935_v63, %v934_v58  ;;  %v2004_v11 = vrot.slane %v1996_v0, %v3925_v5 }
  0xb8   : > { %v768_v12 = vcombine.high %v760_v2, %v760_v2  ;;  %v1995_v14 = vcombine.low %v1987_v18, %v1994_v3  ;;  %v777_v16 = vrot.slane %v3253_v57, %v3925_v5  ;;  %v784_v17 = vrot.slane %v770_v6, %v3925_v5 }
  0xb9   : > { %v769_v15 = vcombine.high %v767_v4, %v767_v4  ;;  %v3471_v19 = vpack.i.bf16 %v1690_v8, %v1673_v52  ;;  %v2011_v20 = vrot.slane %v1997_v9, %v3925_v5  ;;  %v936_v24 = vcombine.high %v934_v58, %v934_v58 }
  0xba   : > { %v1843_v21 = vcombine.low %v760_v2, %v768_v12  ;;  %v785_v25 = vcombine.high %v777_v16, %v777_v16  ;;  %v786_v26 = vcombine.high %v784_v17, %v784_v17  ;;  %v937_v7 = vcombine.high %v3263_v13, %v3263_v13 }
  0xbb   : > { %v1844_v27 = vcombine.low %v767_v4, %v769_v15  ;;  %3472 = vrot.lane.b32.xlu0 %v3471_v19, %s3702_s23  ;;  %v2012_v28 = vcombine.low %v2004_v11, %v2011_v20  ;;  %v944_v31 = vrot.slane %v3263_v13, %v3925_v5  ;;  %v787_v32 = vcombine.high %v3254_v1, %v3254_v1  ;;  %v3264_v15 = vld [vmem:[%s3915_s8 + $0x3] ss:$3 sm:$0xff] }
  0xbc   : > { %v1851_v30 = vrot.slane %v1843_v21, %v3925_v5  ;;  %v1860_v33 = vcombine.low %v777_v16, %v785_v25  ;;  %v1861_v34 = vcombine.low %v784_v17, %v786_v26  ;;  %v951_v35 = vrot.slane %v937_v7, %v3925_v5  ;;  %v3265_v16 = vld [vmem:[%s3915_s8 + $0x1b] ss:$3 sm:$0xff] }
  0xbd   : > { %v1858_v23 = vrot.slane %v1844_v27, %v3925_v5  ;;  %v3481_v37 = vpack.i.bf16 %v2012_v28, %v1995_v14  ;;  %v952_v38 = vcombine.high %v944_v31, %v944_v31  ;;  %v2013_v39 = vcombine.low %v936_v24, %v944_v31 }
  0xbe   : > { %v794_v40 = vrot.slane %v3254_v1, %v3925_v5  ;;  %v1868_v42 = vrot.slane %v1860_v33, %v3925_v5  ;;  %v1875_v43 = vrot.slane %v1861_v34, %v3925_v5  ;;  %v801_v44 = vrot.slane %v787_v32, %v3925_v5  ;;  %v3275_v33 = vld [vmem:[%s3915_s8 + $0x10b] ss:$3 sm:$0x3f] }
  0xbf   : > { %v1859_v47 = vcombine.low %v1851_v30, %v1858_v23  ;;  %3482 = vrot.lane.b32.xlu1 %v3481_v37, %s3701_s21  ;;  %v2014_v45 = vcombine.low %v952_v38, %v951_v35  ;;  %v2021_v48 = vrot.slane %v2013_v39, %v3925_v5  ;;  %v803_v50 = vcombine.high %v3255_v36, %v3255_v36  ;;  %v3266_v38 = vld [vmem:[%s3915_s8 + $0x33] ss:$3 sm:$0x3f] }
  0xc0   : > { %v802_v49 = vcombine.high %v794_v40, %v794_v40  ;;  %v1876_v51 = vcombine.low %v1868_v42, %v1875_v43  ;;  %v810_v52 = vrot.slane %v3255_v36, %v3925_v5  ;;  %v1123_v53 = vcombine.high %v3985_v29, %v3985_v29 }
  0xc1   : > { %v1139_v54 = vcombine.high %v3273_v41, %v3273_v41  ;;  %v2028_v55 = vrot.slane %v2014_v45, %v3925_v5  ;;  %v817_v57 = vrot.slane %v803_v50, %v3925_v5  ;;  %v1146_v60 = vrot.slane %v3273_v41, %v3925_v5 }
  0xc2   : > { %v1877_v58 = vcombine.low %v794_v40, %v802_v49  ;;  %v3476_v61 = vpack.i.bf16 %v1876_v51, %v1859_v47  ;;  %v818_v62 = vcombine.high %v810_v52, %v810_v52  ;;  %v1878_v63 = vcombine.low %v801_v44, %v810_v52 }
  0xc3   : > { %v1137_v0 = vrot.slane %v1123_v53, %v3925_v5  ;;  %v2029_v2 = vcombine.low %v2021_v48, %v2028_v55  ;;  %v819_v18 = vcombine.high %v817_v57, %v817_v57  ;;  %v1153_v3 = vrot.slane %v1139_v54, %v3925_v5 }
  0xc4   : > { %v1885_v29 = vrot.slane %v1877_v58, %v3925_v5  ;;  %3477 = vrot.lane.b32.xlu0 %v3476_v61, %s3701_s21  ;;  %v1892_v4 = vrot.slane %v1878_v63, %v3925_v5  ;;  %v1894_v6 = vcombine.low %v818_v62, %v817_v57  ;;  %v1154_v8 = vcombine.high %v1146_v60, %v1146_v60  ;;  %v3267_v57 = vld [vmem:[%s3915_s8 + $0x4b] ss:$3 sm:$0xff] }
  0xc5   : > { %v1156_v9 = vcombine.high %v3274_v59, %v3274_v59  ;;  %2050 = vrot.lane.b32.xlu1 %v2029_v2, %s3701_s21  ;;  %v1895_v11 = vcombine.low %v819_v18, %v3931_v10  ;;  %v1155_v12 = vcombine.high %v1153_v3, %v1153_v3  ;;  %v1163_v13 = vrot.slane %v3274_v59, %v3925_v5 }
  0xc6   : > { %v2199_v14 = vcombine.low %v1137_v0, %v1146_v60  ;;  %v1893_v17 = vcombine.low %v1885_v29, %v1892_v4  ;;  %v1902_v1 = vrot.slane %v1894_v6, %v3925_v5  ;;  %v2200_v20 = vcombine.low %v1154_v8, %v1153_v3  ;;  %v3285_v6 = vld [vmem:[%s3915_s8 + $0xdc] ss:$3 sm:$0xff] }
  0xc7   : > { %v1170_v19 = vrot.slane %v1156_v9, %v3925_v5  ;;  %v1909_v21 = vrot.slane %v1895_v11, %v3925_v5  ;;  %v1171_v24 = vcombine.high %v1163_v13, %v1163_v13  ;;  %v2216_v10 = vcombine.low %v1155_v12, %v1163_v13 }
  0xc8   : > { %v2207_v25 = vrot.slane %v2199_v14, %v3925_v5  ;;  %v2214_v26 = vrot.slane %v2200_v20, %v3925_v5  ;;  %v989_v27 = vcombine.high %v3264_v15, %v3264_v15  ;;  %v996_v7 = vrot.slane %v3264_v15, %v3925_v5 }
  0xc9   : > { %v1006_v28 = vcombine.high %v3265_v16, %v3265_v16  ;;  %v1910_v30 = vcombine.low %v1902_v1, %v1909_v21  ;;  %v2217_v31 = vcombine.low %v1171_v24, %v1170_v19  ;;  %v2224_v32 = vrot.slane %v2216_v10, %v3925_v5  ;;  %v3276_v24 = vld [vmem:[%s3915_s8 + $0x4] ss:$3 sm:$0xff] }
  0xca   : > { %v1013_v23 = vrot.slane %v3265_v16, %v3925_v5  ;;  %v2215_v34 = vcombine.low %v2207_v25, %v2214_v26  ;;  %v1003_v35 = vrot.slane %v989_v27, %v3925_v5  ;;  %v1004_v36 = vcombine.high %v996_v7, %v996_v7 }
  0xcb   : > { %v1020_v37 = vrot.slane %v1006_v28, %v3925_v5  ;;  %v3486_v39 = vpack.i.bf16 %v1910_v30, %v1893_v17  ;;  %v2231_v40 = vrot.slane %v2217_v31, %v3925_v5  ;;  %v1172_v47 = vcombine.high %v1170_v19, %v1170_v19  ;;  %v3286_v17 = vld [vmem:[%s3915_s8 + $0xf4] ss:$3 sm:$0xff] }
  0xcc   : > { %v1021_v41 = vcombine.high %v1013_v23, %v1013_v23  ;;  %v1005_v42 = vcombine.high %v1003_v35, %v1003_v35  ;;  %v2063_v44 = vcombine.low %v996_v7, %v1004_v36  ;;  %v1173_v45 = vcombine.high %v3275_v33, %v3275_v33 }
  0xcd   : > { %v1022_v43 = vcombine.high %v1020_v37, %v1020_v37  ;;  %3487 = vrot.lane.b32.xlu0 %v3486_v39, %s3701_s21  ;;  %v2232_v48 = vcombine.low %v2224_v32, %v2231_v40  ;;  %v1180_v50 = vrot.slane %v3275_v33, %v3925_v5  ;;  %v1023_v51 = vcombine.high %v3266_v38, %v3266_v38  ;;  %v3277_v33 = vld [vmem:[%s3915_s8 + $0x1c] ss:$3 sm:$0xff] }
  0xce   : > { %v2080_v49 = vcombine.low %v1013_v23, %v1021_v41  ;;  %v2064_v52 = vcombine.low %v1003_v35, %v1005_v42  ;;  %v2071_v53 = vrot.slane %v2063_v44, %v3925_v5  ;;  %v1187_v55 = vrot.slane %v1173_v45, %v3925_v5 }
  0xcf   : > { %v2081_v54 = vcombine.low %v1020_v37, %v1022_v43  ;;  %v3496_v58 = vpack.i.bf16 %v2232_v48, %v2215_v34  ;;  %v1188_v60 = vcombine.high %v1180_v50, %v1180_v50  ;;  %v2233_v61 = vcombine.low %v1172_v47, %v1180_v50 }
  0xd0   : > { %v2088_v59 = vrot.slane %v2080_v49, %v3925_v5  ;;  %v2078_v62 = vrot.slane %v2064_v52, %v3925_v5  ;;  %v1030_v0 = vrot.slane %v3266_v38, %v3925_v5  ;;  %v1037_v2 = vrot.slane %v1023_v51, %v3925_v5 }
  0xd1   : > { %v2095_v63 = vrot.slane %v2081_v54, %v3925_v5  ;;  %3497 = vrot.lane.b32.xlu1 %v3496_v58, %s3703_s26  ;;  %v2234_v18 = vcombine.low %v1188_v60, %v1187_v55  ;;  %v2241_v29 = vrot.slane %v2233_v61, %v3925_v5  ;;  %v1039_v3 = vcombine.high %v3267_v57, %v3267_v57  ;;  %v3287_v55 = vld [vmem:[%s3915_s8 + $0x10c] ss:$3 sm:$0x3f]  ;;  %v3278_v61 = vld [vmem:[%s3915_s8 + $0x34] ss:$3 sm:$0x3f] }
  0xd2   : > { %v1046_v4 = vrot.slane %v3267_v57, %v3925_v5  ;;  %v2079_v8 = vcombine.low %v2071_v53, %v2078_v62  ;;  %v1038_v11 = vcombine.high %v1030_v0, %v1030_v0  ;;  %v1359_v12 = vcombine.high %v4017_v22, %v4017_v22 }
  0xd3   : > { %v2096_v9 = vcombine.low %v2088_v59, %v2095_v63  ;;  %v2248_v13 = vrot.slane %v2234_v18, %v3925_v5  ;;  %v1053_v14 = vrot.slane %v1039_v3, %v3925_v5  ;;  %v1375_v21 = vcombine.high %v3285_v6, %v3285_v6 }
  0xd4   : > { %v1054_v15 = vcombine.high %v1046_v4, %v1046_v4  ;;  %v2098_v16 = vcombine.low %v1037_v2, %v1046_v4  ;;  %v2097_v19 = vcombine.low %v1030_v0, %v1038_v11  ;;  %v1373_v20 = vrot.slane %v1359_v12, %v3925_v5  ;;  %v3279_v11 = vld [vmem:[%s3915_s8 + $0x4c] ss:$3 sm:$0xff] }
  0xd5   : > { %v3491_v1 = vpack.i.bf16 %v2096_v9, %v2079_v8  ;;  %v2249_v25 = vcombine.low %v2241_v29, %v2248_v13  ;;  %v1055_v10 = vcombine.high %v1053_v14, %v1053_v14  ;;  %v1382_v7 = vrot.slane %v3285_v6, %v3925_v5 }
  0xd6   : > { %v2112_v26 = vrot.slane %v2098_v16, %v3925_v5  ;;  %v2114_v27 = vcombine.low %v1054_v15, %v1053_v14  ;;  %v2105_v22 = vrot.slane %v2097_v19, %v3925_v5  ;;  %v1389_v28 = vrot.slane %v1375_v21, %v3925_v5 }
  0xd7   : > { %3492 = vrot.lane.b32.xlu0 %v3491_v1, %s3703_s26  ;;  %v1392_v30 = vcombine.high %v3286_v17, %v3286_v17  ;;  %2270 = vrot.lane.b32.xlu1 %v2249_v25, %s3703_s26  ;;  %v2115_v31 = vcombine.low %v1055_v10, %v4001_v56  ;;  %v1399_v23 = vrot.slane %v3286_v17, %v3925_v5 }
  0xd8   : > { %v2122_v32 = vrot.slane %v2114_v27, %v3925_v5  ;;  %v1225_v34 = vcombine.high %v3276_v24, %v3276_v24  ;;  %v2113_v35 = vcombine.low %v2105_v22, %v2112_v26  ;;  %v1390_v36 = vcombine.high %v1382_v7, %v1382_v7 }
  0xd9   : > { %v1391_v37 = vcombine.high %v1389_v28, %v1389_v28  ;;  %v1406_v38 = vrot.slane %v1392_v30, %v3925_v5  ;;  %v2129_v39 = vrot.slane %v2115_v31, %v3925_v5  ;;  %v1407_v40 = vcombine.high %v1399_v23, %v1399_v23 }
  0xda   : > { %v2419_v41 = vcombine.low %v1373_v20, %v1382_v7  ;;  %v1232_v47 = vrot.slane %v3276_v24, %v3925_v5  ;;  %v2420_v42 = vcombine.low %v1390_v36, %v1389_v28  ;;  %v1239_v43 = vrot.slane %v1225_v34, %v3925_v5 }
  0xdb   : > { %v2436_v56 = vcombine.low %v1391_v37, %v1399_v23  ;;  %v1242_v44 = vcombine.high %v3277_v33, %v3277_v33  ;;  %v2130_v45 = vcombine.low %v2122_v32, %v2129_v39  ;;  %v2437_v49 = vcombine.low %v1407_v40, %v1406_v38 }
  0xdc   : > { %v2427_v48 = vrot.slane %v2419_v41, %v3925_v5  ;;  %v1240_v50 = vcombine.high %v1232_v47, %v1232_v47  ;;  %v2434_v51 = vrot.slane %v2420_v42, %v3925_v5  ;;  %v1241_v53 = vcombine.high %v1239_v43, %v1239_v43 }
  0xdd   : > { %v2444_v52 = vrot.slane %v2436_v56, %v3925_v5  ;;  %v1249_v54 = vrot.slane %v3277_v33, %v3925_v5  ;;  %v3501_v57 = vpack.i.bf16 %v2130_v45, %v2113_v35  ;;  %v2451_v58 = vrot.slane %v2437_v49, %v3925_v5  ;;  %v3235_v49 = vld [vmem:[%s3915_s8 + $0xa8] ss:$3 sm:$0xff] }
  0xde   : > { %v1256_v59 = vrot.slane %v1242_v44, %v3925_v5  ;;  %v2283_v60 = vcombine.low %v1232_v47, %v1240_v50  ;;  %v2435_v62 = vcombine.low %v2427_v48, %v2434_v51  ;;  %v2284_v0 = vcombine.low %v1239_v43, %v1241_v53  ;;  %v2557_v43 = vld [vmem:[#allocation5] sm:$0x7] }
  0xdf   : > { %v1257_v63 = vcombine.high %v1249_v54, %v1249_v54  ;;  %v1408_v2 = vcombine.high %v1406_v38, %v1406_v38  ;;  %3502 = vrot.lane.b32.xlu0 %v3501_v57, %s3703_s26  ;;  %v2452_v18 = vcombine.low %v2444_v52, %v2451_v58  ;;  %v1409_v4 = vcombine.high %v3287_v55, %v3287_v55  ;;  %v3232_v50 = vld [vmem:[%s3915_s8 + $0x60] ss:$3 sm:$0xff]  ;;  %v3234_v51 = vld [vmem:[%s3915_s8 + $0x90] ss:$3 sm:$0xff] }
  0xe0   : > { %v1258_v29 = vcombine.high %v1256_v59, %v1256_v59  ;;  %v2291_v3 = vrot.slane %v2283_v60, %v3925_v5  ;;  %v2298_v6 = vrot.slane %v2284_v0, %v3925_v5  ;;  %v1416_v9 = vrot.slane %v3287_v55, %v3925_v5  ;;  %v3233_v57 = vld [vmem:[%s3915_s8 + $0x78] ss:$3 sm:$0x3f] }
  0xe1   : > { %v2300_v8 = vcombine.low %v1249_v54, %v1257_v63  ;;  %v1259_v12 = vcombine.high %v3278_v61, %v3278_v61  ;;  %v3511_v13 = vpack.i.bf16 %v2452_v18, %v2435_v62  ;;  %v1423_v15 = vrot.slane %v1409_v4, %v3925_v5  ;;  %v4227_v54 = vld [vmem:[%s3915_s8 + $0xc0] ss:$3 sm:$0x3f] }
  0xe2   : > { %v2301_v14 = vcombine.low %v1256_v59, %v1258_v29  ;;  %v1266_v16 = vrot.slane %v3278_v61, %v3925_v5  ;;  %v2299_v17 = vcombine.low %v2291_v3, %v2298_v6  ;;  %v1424_v19 = vcombine.high %v1416_v9, %v1416_v9 }
  0xe3   : > { %v2308_v1 = vrot.slane %v2300_v8, %v3925_v5  ;;  %v2453_v20 = vcombine.low %v1408_v2, %v1416_v9  ;;  %3512 = vrot.lane.b32.xlu1 %v3511_v13, %s3704_s29  ;;  %v1273_v24 = vrot.slane %v1259_v12, %v3925_v5  ;;  %v1275_v10 = vcombine.high %v3279_v11, %v3279_v11 }
  0xe4   : > { %v2315_v21 = vrot.slane %v2301_v14, %v3925_v5  ;;  %v1274_v25 = vcombine.high %v1266_v16, %v1266_v16  ;;  %v2454_v26 = vcombine.low %v1424_v19, %v1423_v15  ;;  %v1282_v22 = vrot.slane %v3279_v11, %v3925_v5 }
  0xe5   : > { %v2461_v27 = vrot.slane %v2453_v20, %v3925_v5  ;;  %v1289_v28 = vrot.slane %v1275_v10, %v3925_v5  ;;  %v381_v52 = vcombine.high %v3234_v51, %v3234_v51  ;;  %v398_v53 = vcombine.high %v3235_v49, %v3235_v49 }
  0xe6   : > { %v2316_v7 = vcombine.low %v2308_v1, %v2315_v21  ;;  %v2317_v30 = vcombine.low %v1266_v16, %v1274_v25  ;;  %v2468_v31 = vrot.slane %v2454_v26, %v3925_v5  ;;  %v1290_v32 = vcombine.high %v1282_v22, %v1282_v22 }
  0xe7   : > { %v2318_v23 = vcombine.low %v1273_v24, %v1282_v22  ;;  %v1291_v34 = vcombine.high %v1289_v28, %v1289_v28  ;;  %v348_v55 = vcombine.high %v3232_v50, %v3232_v50  ;;  %v395_v58 = vrot.slane %v381_v52, %v3925_v5 }
  0xe8   : > { %v3506_v33 = vpack.i.bf16 %v2316_v7, %v2299_v17  ;;  %v2325_v35 = vrot.slane %v2317_v30, %v3925_v5  ;;  %v2469_v36 = vcombine.low %v2461_v27, %v2468_v31  ;;  %v2334_v38 = vcombine.low %v1290_v32, %v1289_v28 }
  0xe9   : > { %v2332_v37 = vrot.slane %v2318_v23, %v3925_v5  ;;  %v2335_v39 = vcombine.low %v1291_v34, %v4032_v46  ;;  %v3705_v46 = vmov 65535   ;;  %v405_v59 = vrot.slane %v3235_v49, %v3925_v5 }
  0xea   : > { %3507 = vrot.lane.b32.xlu0 %v3506_v33, %s3704_s29  ;;  %2490 = vrot.lane.b32.xlu1 %v2469_v36, %s3704_s29  ;;  %v2342_v40 = vrot.slane %v2334_v38, %v3925_v5  ;;  %v2586_v44 = vsel %vm2584_vm0, 4294967295, %v3705_v46  ;;  %v412_v60 = vrot.slane %v398_v53, %v3925_v5  ;;  %v422_v61 = vrot.slane %v4227_v54, %v3925_v5 }
  0xeb   : > { %v2333_v41 = vcombine.low %v2325_v35, %v2332_v37  ;;  %v2349_v47 = vrot.slane %v2335_v39, %v3925_v5  ;;  %v2587_v45 = vsel %vm2585_vm1, %v2586_v44, 0  ;;  %v4238_v63 = vrot.slane %v3232_v50, %v3925_v5 }
  0xec   : > { %v2589_v48 = vand.u32 %v2587_v45, %v2557_v43  ;;  %v362_v0 = vrot.slane %v348_v55, %v3925_v5  ;;  %v365_v2 = vcombine.high %v3233_v57, %v3233_v57  ;;  %v372_v18 = vrot.slane %v3233_v57, %v3925_v5 }
  0xed   : > { %v2350_v42 = vcombine.low %v2342_v40, %v2349_v47  ;;  %v388_v29 = vrot.slane %v3234_v51, %v3925_v5  ;;  %v397_v3 = vcombine.high %v395_v58, %v395_v58  ;;  %v413_v4 = vcombine.high %v405_v59, %v405_v59  ;;  %v3231_v51 = vld [vmem:[%s3915_s8 + $0x48] ss:$3 sm:$0xff] }
  0xee   : > { %3321 = vmatprep.subr.bf16.mxu1 %v2589_v48  ;;  %3307 = vmatprep.subr.bf16.mxu0 %v2589_v48  ;;  %v414_v6 = vcombine.high %v412_v60, %v412_v60  ;;  %v430_v8 = vcombine.high %v422_v61, %v422_v61  ;;  %v363_v9 = vcombine.high %v4238_v63, %v4238_v63 }
  0xef   : > { %v3516_v56 = vpack.i.bf16 %v2350_v42, %v2333_v41  ;;  %3322 = vmatpush3.bf16.msra.mxu1 %v2589_v48  ;;  %3308 = vmatpush3.bf16.msra.mxu0 %v2589_v48  ;;  %v364_v11 = vcombine.high %v362_v0, %v362_v0  ;;  %v379_v12 = vrot.slane %v365_v2, %v3925_v5 }
  0xf0   : > { %v380_v13 = vcombine.high %v372_v18, %v372_v18  ;;  %v396_v14 = vcombine.high %v388_v29, %v388_v29  ;;  %v1527_v17 = vcombine.low %v395_v58, %v397_v3  ;;  %v1528_v1 = vcombine.low %v405_v59, %v413_v4 }
  0xf1   : > { %3517 = vrot.lane.b32.xlu0 %v3516_v56, %s3704_s29  ;;  %v1544_v19 = vcombine.low %v412_v60, %v414_v6  ;;  %v1545_v20 = vcombine.low %v422_v61, %v430_v8  ;;  %v1493_v21 = vcombine.low %v363_v9, %v362_v0  ;;  %v1494_v24 = vcombine.low %v364_v11, %v372_v18 }
  0xf2   : > { %v1510_v25 = vcombine.low %v380_v13, %v379_v12  ;;  %v1511_v10 = vcombine.low %v388_v29, %v396_v14  ;;  %v1535_v26 = vrot.slane %v1527_v17, %v3925_v5  ;;  %v1542_v27 = vrot.slane %v1528_v1, %v3925_v5 }
  0xf3   : > { %v1552_v22 = vrot.slane %v1544_v19, %v3925_v5  ;;  %v1559_v7 = vrot.slane %v1545_v20, %v3925_v5  ;;  %v1501_v31 = vrot.slane %v1493_v21, %v3925_v5  ;;  %v1508_v32 = vrot.slane %v1494_v24, %v3925_v5 }
  0xf4   : > { %v1518_v23 = vrot.slane %v1510_v25, %v3925_v5  ;;  %v1525_v33 = vrot.slane %v1511_v10, %v3925_v5  ;;  %v1543_v36 = vcombine.low %v1535_v26, %v1542_v27  ;;  %v331_v18 = vcombine.high %v3231_v51, %v3231_v51 }
  0xf5   : > { %v1560_v37 = vcombine.low %v1552_v22, %v1559_v7  ;;  %v1509_v40 = vcombine.low %v1501_v31, %v1508_v32  ;;  %v4272_v13 = vrot.slane %v3231_v51, %v3925_v5  ;;  %v3237_v32 = vld [vmem:[%s3915_s8 + $0xd8] ss:$3 sm:$0xff] }
  0xf6   : > { %v4235_v62 = vpop.permute.xlu1 %3432  ;;  %v1526_v41 = vcombine.low %v1518_v23, %v1525_v33  ;;  %v345_v17 = vrot.slane %v331_v18, %v3925_v5  ;;  %v3238_v23 = vld [vmem:[%s3915_s8 + $0xf0] ss:$3 sm:$0xff]  ;;  %v246_v33 = vld [vmem:[%s3915_s8] ss:$3 sm:$0xff] }
  0xf7   : > { %v3435_v52 = vunpack.i.h.bf16 %v4235_v62  ;;  %v3434_v53 = vunpack.i.l.bf16 %v4235_v62  ;;  %v346_v19 = vcombine.high %v4272_v13, %v4272_v13 }
  0xf8   : > { %v347_v20 = vcombine.high %v345_v17, %v345_v17 }
  0xf9   : > { %v1476_v21 = vcombine.low %v346_v19, %v345_v17 }
  0xfa   : > { %v3423_v15 = vpop.permute.xlu0 %3422  ;;  %v1477_v24 = vcombine.low %v347_v20, %v4238_v63  ;;  %v431_v63 = vcombine.high %v3237_v32, %v3237_v32 }
  0xfb   : > { %v3425_v38 = vunpack.i.h.bf16 %v3423_v15  ;;  %v3424_v39 = vunpack.i.l.bf16 %v3423_v15  ;;  %v1484_v10 = vrot.slane %v1476_v21, %v3925_v5 }
  0xfc   : > { %v1491_v26 = vrot.slane %v1477_v24, %v3925_v5 }
  0xfd   : > { %v2508_v55 = vsel %vm2503_vm2, %v1509_v40, %v3424_v39  ;;  %v2509_v57 = vsel %vm2503_vm2, %v1526_v41, %v3425_v38  ;;  %v445_v38 = vrot.slane %v431_v63, %v3925_v5  ;;  %v448_v39 = vcombine.high %v3238_v23, %v3238_v23 }
  0xfe   : > { %v2520_v8 = vsel %vm2515_vm3, %v2508_v55, %v3434_v53  ;;  %v2521_v9 = vsel %vm2515_vm3, %v2509_v57, %v3435_v52  ;;  %v1492_v27 = vcombine.low %v1484_v10, %v1491_v26  ;;  %v455_v40 = vrot.slane %v3238_v23, %v3925_v5 }
  0xff   : > { %v3438_v16 = vpop.permute.xlu1 %3437  ;;  %v281_v41 = vcombine.high %v246_v33, %v246_v33 }
 0x100   : > { %v3440_v47 = vunpack.i.h.bf16 %v3438_v16  ;;  %v3439_v42 = vunpack.i.l.bf16 %v3438_v16 }
 0x103   : > { %v3428_v28 = vpop.permute.xlu0 %3427 }
 0x104   : > { %v3430_v34 = vunpack.i.h.bf16 %v3428_v28  ;;  %v3429_v35 = vunpack.i.l.bf16 %v3428_v28 }
 0x106   : > { %v2510_v46 = vsel %vm2503_vm2, %v1543_v36, %v3429_v35  ;;  %v2511_v44 = vsel %vm2503_vm2, %v1560_v37, %v3430_v34  ;;  %v3229_v34 = vld [vmem:[%s3915_s8 + $0x18] ss:$3 sm:$0xff]  ;;  %v415_v36 = vcombine.high %v4227_v54, %v4227_v54  ;;  %v438_v37 = vrot.slane %v3237_v32, %v3925_v5 }
 0x107   : > { %v2522_v58 = vsel %vm2515_vm3, %v2510_v46, %v3439_v42  ;;  %v2523_v59 = vsel %vm2515_vm3, %v2511_v44, %v3440_v47  ;;  %v298_v47 = vcombine.high %v3229_v34, %v3229_v34  ;;  %v3239_v46 = vld [vmem:[%s3915_s8 + $0x108] ss:$3 sm:$0x3f]  ;;  %v447_v44 = vcombine.high %v445_v38, %v445_v38 }
 0x108   : > { %v3448_v30 = vpop.permute.xlu1 %3447  ;;  %v429_v42 = vrot.slane %v415_v36, %v3925_v5  ;;  %v295_v54 = vrot.slane %v281_v41, %v3925_v5  ;;  %v305_v51 = vrot.slane %v3229_v34, %v3925_v5  ;;  %v465_v53 = vcombine.high %v3239_v46, %v3239_v46 }
 0x109   : > { %v3450_v45 = vunpack.i.h.bf16 %v3448_v30  ;;  %v3449_v48 = vunpack.i.l.bf16 %v3448_v30  ;;  %v312_v52 = vrot.slane %v298_v47, %v3925_v5  ;;  %v472_v55 = vrot.slane %v3239_v46, %v3925_v5 }
 0x10a   : > { %v1561_v57 = vcombine.low %v429_v42, %v438_v37 }
 0x10b   : > { %v2534_v0 = vsel %vm2527_vm4, %v2522_v58, %v3449_v48  ;;  %v2535_v2 = vsel %vm2527_vm4, %v2523_v59, %v3450_v45  ;;  %v462_v45 = vrot.slane %v448_v39, %v3925_v5  ;;  %v463_v48 = vcombine.high %v455_v40, %v455_v40 }
 0x10c   : > { %v1578_v59 = vcombine.low %v447_v44, %v455_v40  ;;  %v314_v18 = vcombine.high %v312_v52, %v312_v52 }
 0x10f   : > { %v3443_v56 = vpop.permute.xlu0 %3442 }
 0x110   : > { %v3445_v60 = vunpack.i.h.bf16 %v3443_v56  ;;  %v3444_v61 = vunpack.i.l.bf16 %v3443_v56  ;;  %v446_v56 = vcombine.high %v438_v37, %v438_v37 }
 0x112   : > { %v2532_v11 = vsel %vm2527_vm4, %v2520_v8, %v3444_v61  ;;  %v2533_v12 = vsel %vm2527_vm4, %v2521_v9, %v3445_v60  ;;  %v1562_v58 = vcombine.low %v446_v56, %v445_v38  ;;  %v1579_v60 = vcombine.low %v463_v48, %v462_v45 }
 0x113   : > { %v3458_v43 = vpop.permute.xlu1 %3457  ;;  %v1569_v9 = vrot.slane %v1561_v57, %v3925_v5 }
 0x114   : > { %v3460_v49 = vunpack.i.h.bf16 %v3458_v43  ;;  %v3459_v50 = vunpack.i.l.bf16 %v3458_v43  ;;  %v288_v43 = vrot.slane %v246_v33, %v3925_v5 }
 0x116   : > { %v2546_v29 = vsel %vm2539_vm5, %v2534_v0, %v3459_v50  ;;  %v2547_v3 = vsel %vm2539_vm5, %v2535_v2, %v3460_v49  ;;  %v296_v61 = vcombine.high %v288_v43, %v288_v43  ;;  %v297_v0 = vcombine.high %v295_v54, %v295_v54 }
 0x117   : > { %v2554_v14 = vpack.c.bf16 %v2547_v3, %v2546_v29  ;;  %v313_v2 = vcombine.high %v305_v51, %v305_v51  ;;  %v464_v29 = vcombine.high %v462_v45, %v462_v45  ;;  %v479_v3 = vrot.slane %v465_v53, %v3925_v5 }
 0x119   : > { %v1442_v17 = vcombine.low %v305_v51, %v313_v2  ;;  %v1595_v21 = vcombine.low %v464_v29, %v472_v55 }
 0x11a   : > { %v3453_v62 = vpop.permute.xlu0 %3452 }
 0x11b   : > { %v3455_v4 = vunpack.i.h.bf16 %v3453_v62  ;;  %v3454_v6 = vunpack.i.l.bf16 %v3453_v62  ;;  %v480_v62 = vcombine.high %v472_v55, %v472_v55  ;;  %v1450_v23 = vrot.slane %v1442_v17, %v3925_v5 }
 0x11c   : > { %v1603_v39 = vrot.slane %v1595_v21, %v3925_v5 }
 0x11d   : > { %v2544_v15 = vsel %vm2539_vm5, %v2532_v11, %v3454_v6  ;;  %v2545_v16 = vsel %vm2539_vm5, %v2533_v12, %v3455_v4  ;;  %v3230_v4 = vld [vmem:[%s3915_s8 + $0x30] ss:$3 sm:$0x3f]  ;;  %v1576_v11 = vrot.slane %v1562_v58, %v3925_v5  ;;  %v1586_v12 = vrot.slane %v1578_v59, %v3925_v5 }
 0x11e   : > { %v2553_v1 = vpack.c.bf16 %v2545_v16, %v2544_v15  ;;  %v1425_v15 = vcombine.low %v288_v43, %v296_v61  ;;  %v1426_v16 = vcombine.low %v295_v54, %v297_v0  ;;  %v315_v19 = vcombine.high %v3230_v4, %v3230_v4 }
 0x11f   : > { %v4292_v30 = vpop.permute.xlu1 %3467  ;;  %v322_v20 = vrot.slane %v3230_v4, %v3925_v5  ;;  %v1596_v24 = vcombine.low %v480_v62, %v479_v3  ;;  %v1577_v10 = vcombine.low %v1569_v9, %v1576_v11 }
 0x120   : > { %3313 = vmatprep.mubr.msk.bf16.mxu1 %vm2565_vm6, %v2553_v1  ;;  %v1443_v1 = vcombine.low %v312_v52, %v314_v18  ;;  %v329_v34 = vrot.slane %v315_v19, %v3925_v5  ;;  %v3470_v37 = vunpack.i.h.bf16 %v4292_v30  ;;  %v3469_v38 = vunpack.i.l.bf16 %v4292_v30 }
 0x121   : > { %3314 = vmatmul.mubr.msk.bf16.vlgmr.msra.gmra.mrb[0].mxu1 %vm2565_vm6, %v2554_v14  ;;  %v1593_v14 = vrot.slane %v1579_v60, %v3925_v5  ;;  %v330_v36 = vcombine.high %v322_v20, %v322_v20  ;;  %v1610_v40 = vrot.slane %v1596_v24, %v3925_v5 }
 0x122   : > { %v1457_v33 = vrot.slane %v1443_v1, %v3925_v5  ;;  %v1460_v45 = vcombine.low %v329_v34, %v4272_v13  ;;  %v2512_v48 = vsel %vm2503_vm2, %v1577_v10, %v3469_v38 }
 0x123   : > { %v1594_v26 = vcombine.low %v1586_v12, %v1593_v14  ;;  %v1459_v44 = vcombine.low %v322_v20, %v330_v36  ;;  %v1611_v51 = vcombine.low %v1603_v39, %v1610_v40 }
 0x124   : > { %v4282_v25 = vpop.permute.xlu0 %3462  ;;  %v4294_v31 = vpop.permute.xlu1 %1830  ;;  %v1458_v46 = vcombine.low %v1450_v23, %v1457_v33  ;;  %v1474_v11 = vrot.slane %v1460_v45, %v3925_v5 }
 0x125   : > { %v2513_v54 = vsel %vm2503_vm2, %v1594_v26, %v3470_v37  ;;  %v3464_v30 = vunpack.i.l.bf16 %v4282_v25  ;;  %v3465_v59 = vunpack.i.h.bf16 %v4282_v25  ;;  %v2514_v25 = vsel %vm2503_vm2, %v1611_v51, %v4294_v31 }
 0x127   : > { %v2505_v9 = vsel %vm2503_vm2, %v1458_v46, %v3465_v59 }
 0x12d   : > { %v4286_v22 = vpop.permute.xlu0 %3472 }
 0x12e   : > { %v3475_v7 = vunpack.i.h.bf16 %v4286_v22  ;;  %v3474_v26 = vunpack.i.l.bf16 %v4286_v22 }
 0x130   : > { %v4290_v28 = vsel %vm2503_vm2, %v1492_v27, %v3475_v7  ;;  %v1433_v27 = vrot.slane %v1425_v15, %v3925_v5  ;;  %v1440_v7 = vrot.slane %v1426_v16, %v3925_v5 }
 0x131   : > { %v4300_v35 = vpop.permute.xlu1 %3482 }
 0x132   : > { %v3485_v41 = vunpack.i.h.bf16 %v4300_v35  ;;  %v3484_v47 = vunpack.i.l.bf16 %v4300_v35  ;;  %v1441_v43 = vcombine.low %v1433_v27, %v1440_v7 }
 0x134   : > { %v2524_v55 = vsel %vm2515_vm3, %v2512_v48, %v3484_v47  ;;  %v2525_v35 = vsel %vm2515_vm3, %v2513_v54, %v3485_v41  ;;  %v2504_v4 = vsel %vm2503_vm2, %v1441_v43, %v3464_v30 }
 0x136   : > { %v4312_v49 = vpop.permute.xlu0 %3477 }
 0x137   : > { %v4314_v50 = vpop.permute.xlu1 %2050  ;;  %v3479_v60 = vunpack.i.l.bf16 %v4312_v49  ;;  %v3480_v0 = vunpack.i.h.bf16 %v4312_v49 }
 0x138   : > { %v2526_v12 = vsel %vm2515_vm3, %v2514_v25, %v4314_v50 }
 0x139   : > { %v2516_v49 = vsel %vm2515_vm3, %v2504_v4, %v3479_v60  ;;  %v2517_v15 = vsel %vm2515_vm3, %v2505_v9, %v3480_v0 }
 0x13f   : > { %v4321_v6 = vpop.permute.xlu0 %3487 }
 0x143   : > { %v3498_v8 = vpop.permute.xlu1 %3497 }
 0x144   : > { %v3500_v42 = vunpack.i.h.bf16 %v3498_v8  ;;  %v3499_v56 = vunpack.i.l.bf16 %v3498_v8  ;;  %v1467_v8 = vrot.slane %v1459_v44, %v3925_v5 }
 0x146   : > { %v2536_v13 = vsel %vm2527_vm4, %v2524_v55, %v3499_v56  ;;  %v2537_v61 = vsel %vm2527_vm4, %v2525_v35, %v3500_v42  ;;  %v1475_v27 = vcombine.low %v1467_v8, %v1474_v11  ;;  %v4383_v56 = vld [vmem:[#allocation7] ss:$0 sm:$0xff] }
 0x148   : > { %v2506_v34 = vsel %vm2503_vm2, %v1475_v27, %v3474_v26 }
 0x149   : > { %v3493_v32 = vpop.permute.xlu0 %3492  ;;  %v2271_v63 = vpop.permute.xlu1 %2270 }
 0x14a   : > { %v3495_v29 = vunpack.i.h.bf16 %v3493_v32  ;;  %v3494_v3 = vunpack.i.l.bf16 %v3493_v32  ;;  %v2538_v16 = vsel %vm2527_vm4, %v2526_v12, %v2271_v63  ;;  %v3490_v32 = vunpack.i.h.bf16 %v4321_v6 }
 0x14b   : > { %v3489_v63 = vunpack.i.l.bf16 %v4321_v6 }
 0x14c   : > { %v2528_v20 = vsel %vm2527_vm4, %v2516_v49, %v3494_v3  ;;  %v2529_v21 = vsel %vm2527_vm4, %v2517_v15, %v3495_v29  ;;  %v2519_v22 = vsel %vm2515_vm3, %v4290_v28, %v3490_v32 }
 0x14d   : > { %v2518_v37 = vsel %vm2515_vm3, %v2506_v34, %v3489_v63 }
 0x151   : > { %v3503_v52 = vpop.permute.xlu0 %3502 }
 0x152   : > { %v3505_v23 = vunpack.i.h.bf16 %v3503_v52  ;;  %v3504_v33 = vunpack.i.l.bf16 %v3503_v52 }
 0x154   : > { %v2530_v40 = vsel %vm2527_vm4, %v2518_v37, %v3504_v33  ;;  %v2531_v6 = vsel %vm2527_vm4, %v2519_v22, %v3505_v23 }
 0x155   : > { %v3513_v53 = vpop.permute.xlu1 %3512 }
 0x156   : > { %v3515_v57 = vunpack.i.h.bf16 %v3513_v53  ;;  %v3514_v58 = vunpack.i.l.bf16 %v3513_v53 }
 0x158   : > { %v2548_v2 = vsel %vm2539_vm5, %v2536_v13, %v3514_v58  ;;  %v2549_v18 = vsel %vm2539_vm5, %v2537_v61, %v3515_v57 }
 0x159   : > { %v2555_v62 = vpack.c.bf16 %v2549_v18, %v2548_v2 }
 0x15b   : > { %3317 = vmatprep.mubr.msk.bf16.mxu1 %vm2565_vm6, %v2555_v62 }
 0x15c   : > { %v3508_v14 = vpop.permute.xlu0 %3507  ;;  %v2491_v1 = vpop.permute.xlu1 %2490 }
 0x15d   : > { %v3510_v17 = vunpack.i.h.bf16 %v3508_v14  ;;  %v3509_v31 = vunpack.i.l.bf16 %v3508_v14  ;;  %v2550_v19 = vsel %vm2539_vm5, %v2538_v16, %v2491_v1 }
 0x15e   : > { %v2556_v24 = vpack.c.bf16 %v2550_v19, %v2550_v19 }
 0x15f   : > { %v2540_v10 = vsel %vm2539_vm5, %v2528_v20, %v3509_v31  ;;  %v2541_v50 = vsel %vm2539_vm5, %v2529_v21, %v3510_v17 }
 0x160   : > { %v2551_v7 = vpack.c.bf16 %v2541_v50, %v2540_v10  ;;  %3318 = vmatmul.mubr.msk.bf16.gmra.mrb[4].mxu1 %vm2565_vm6, %v2556_v24 }
 0x162   : > { %3309 = vmatprep.mubr.msk.bf16.mxu0 %vm2565_vm6, %v2551_v7 }
 0x163   : > { %v3518_v36 = vpop.permute.xlu0 %3517 }
 0x164   : > { %v3520_v38 = vunpack.i.h.bf16 %v3518_v36  ;;  %v3519_v39 = vunpack.i.l.bf16 %v3518_v36 }
 0x166   : > { %v2542_v41 = vsel %vm2539_vm5, %v2530_v40, %v3519_v39  ;;  %v2543_v47 = vsel %vm2539_vm5, %v2531_v6, %v3520_v38 }
 0x167   : > { %v2552_v42 = vpack.c.bf16 %v2543_v47, %v2542_v41 }
 0x169   : > { %3310 = vmatmul.mubr.msk.bf16.vlgmr.msra.gmra.mrb[0].mxu0 %vm2565_vm6, %v2552_v42 }
 0x1f4   : > { %v3315_v43 = vpop.f32.mrb[0].mxu1 }
 0x1f5   : > { %v2650_v46 = vadd.f32 %v3315_v43, %v4383_v56  ;;  %v2641_v44 = vpop.f32.mrb[1].mxu1 }
 0x1f6   : > { %v2642_v28 = vadd.f32 %v4383_v56, %v2641_v44  ;;  %v3316_v45 = vpop.f32.mrb[2].mxu1 }
 0x1f7   : > { %v2784_v48 = vcombine.high %v2650_v46, %v2650_v46  ;;  %v2791_v54 = vrot.slane %v2650_v46, %v3925_v5  ;;  %v2653_v30 = vadd.f32 %v3316_v45, %v4383_v56  ;;  %v2644_v51 = vpop.f32.mrb[3].mxu1 }
 0x1f8   : > { %v2750_v52 = vcombine.high %v2642_v28, %v2642_v28  ;;  %v4390_v53 = vrot.slane %v2642_v28, %v3925_v5  ;;  %v2645_v55 = vadd.f32 %v4383_v56, %v2644_v51 }
 0x1f9   : > { %v2798_v35 = vrot.slane %v2784_v48, %v3925_v5  ;;  %v2799_v57 = vcombine.high %v2791_v54, %v2791_v54  ;;  %v2808_v58 = vrot.slane %v2653_v30, %v3925_v5  ;;  %v2801_v21 = vcombine.high %v2653_v30, %v2653_v30 }
 0x1fa   : > { %v2764_v59 = vrot.slane %v2750_v52, %v3925_v5  ;;  %v2765_v60 = vcombine.high %v4390_v53, %v4390_v53  ;;  %v2767_v13 = vcombine.high %v2645_v55, %v2645_v55  ;;  %v2774_v61 = vrot.slane %v2645_v55, %v3925_v5 }
 0x1fb   : > { %v2800_v0 = vcombine.high %v2798_v35, %v2798_v35  ;;  %v2816_v2 = vcombine.high %v2808_v58, %v2808_v58  ;;  %v2970_v8 = vcombine.low %v2791_v54, %v2799_v57  ;;  %v2815_v24 = vrot.slane %v2801_v21, %v3925_v5 }
 0x1fc   : > { %v4399_v18 = vcombine.low %v2765_v60, %v2764_v59  ;;  %v2766_v29 = vcombine.high %v2764_v59, %v2764_v59  ;;  %v2781_v3 = vrot.slane %v2767_v13, %v3925_v5  ;;  %v2782_v62 = vcombine.high %v2774_v61, %v2774_v61 }
 0x1fd   : > { %v2986_v4 = vcombine.low %v2798_v35, %v2800_v0  ;;  %v2987_v25 = vcombine.low %v2808_v58, %v2816_v2  ;;  %v2984_v31 = vrot.slane %v2970_v8, %v3925_v5  ;;  %v2817_v10 = vcombine.high %v2815_v24, %v2815_v24 }
 0x1fe   : > { %v2783_v9 = vcombine.high %v2781_v3, %v2781_v3  ;;  %v2953_v11 = vcombine.low %v2766_v29, %v2774_v61  ;;  %v2967_v15 = vrot.slane %v2782_v62, %v3925_v5 }
 0x1ff   : > { %v2994_v49 = vrot.slane %v2986_v4, %v3925_v5  ;;  %v3001_v12 = vrot.slane %v2987_v25, %v3925_v5  ;;  %v3003_v26 = vcombine.low %v2815_v24, %v2817_v10 }
 0x200   : > { %v2960_v14 = vrot.slane %v2953_v11, %v3925_v5  ;;  %v2969_v16 = vcombine.low %v2781_v3, %v2783_v9 }
 0x201   : > { %v3002_v17 = vcombine.low %v2994_v49, %v3001_v12  ;;  %v3010_v40 = vrot.slane %v3003_v26, %v3925_v5 }
 0x202   : > { %v2968_v1 = vcombine.low %v2960_v14, %v2967_v15  ;;  %v2977_v19 = vrot.slane %v2969_v16, %v3925_v5 }
 0x203   : > { %3090 = vst.msk [vmem:[%s4409_s28 + $0x38] sm:$0xff] %vm3081_vm7, %v3002_v17 }
 0x204   : > { %v2985_v20 = vcombine.low %v2977_v19, %v2984_v31  ;;  %3088 = vst.msk [vmem:[%s4409_s28 + $0x28] sm:$0x3f] %vm3084_vm8, %v2968_v1 }
 0x206   : > { %3089 = vst.msk [vmem:[%s4409_s28 + $0x30] sm:$0xff] %vm3081_vm7, %v2985_v20 }
 0x233   : > { %v3319_v50 = vpop.f32.mrb[4].mxu1 }
 0x234   : > { %v2666_v27 = vadd.f32 %v3319_v50, %v4383_v56  ;;  %v2657_v7 = vpop.f32.mrb[5].mxu1 }
 0x235   : > { %v2658_v32 = vadd.f32 %v4383_v56, %v2657_v7  ;;  %v3320_v63 = vpop.f32.mrb[6].mxu1 }
 0x236   : > { %v2852_v23 = vcombine.high %v2666_v27, %v2666_v27  ;;  %v2859_v33 = vrot.slane %v2666_v27, %v3925_v5  ;;  %v2660_v34 = vpop.f32.mrb[7].mxu1 }
 0x237   : > { %v2818_v36 = vcombine.high %v2658_v32, %v2658_v32  ;;  %v2825_v37 = vrot.slane %v2658_v32, %v3925_v5  ;;  %v2661_v22 = vadd.f32 %v4383_v56, %v2660_v34 }
 0x238   : > { %v2866_v38 = vrot.slane %v2852_v23, %v3925_v5  ;;  %v2867_v39 = vcombine.high %v2859_v33, %v2859_v33 }
 0x239   : > { %v2832_v6 = vrot.slane %v2818_v36, %v3925_v5  ;;  %v2833_v41 = vcombine.high %v2825_v37, %v2825_v37  ;;  %v3017_v47 = vrot.slane %v2825_v37, %v3925_v5  ;;  %v2835_v42 = vcombine.high %v2661_v22, %v2661_v22 }
 0x23a   : > { %v2868_v43 = vcombine.high %v2866_v38, %v2866_v38  ;;  %v3053_v46 = vcombine.low %v2867_v39, %v2866_v38  ;;  %v2842_v44 = vrot.slane %v2661_v22, %v3925_v5 }
 0x23b   : > { %v3018_v28 = vcombine.low %v3010_v40, %v3017_v47  ;;  %v3019_v45 = vcombine.low %v2833_v41, %v2832_v6  ;;  %v2834_v48 = vcombine.high %v2832_v6, %v2832_v6  ;;  %v2849_v54 = vrot.slane %v2835_v42, %v3925_v5 }
 0x23c   : > { %v3060_v30 = vrot.slane %v3053_v46, %v3925_v5  ;;  %v3067_v51 = vrot.slane %v2868_v43, %v3925_v5  ;;  %v3311_v52 = vpop.f32.mrb[0].mxu0  ;;  %v2850_v55 = vcombine.high %v2842_v44, %v2842_v44  ;;  %v2951_v43 = vrot.slane %v4399_v18, %v3925_v5 }
 0x23d   : > { %3091 = vst.msk [vmem:[%s4409_s28 + $0x40] sm:$0x3f] %vm3084_vm8, %v3018_v28  ;;  %v2634_v35 = vadd.f32 %v3311_v52, %v4383_v56  ;;  %v2625_v57 = vpop.f32.mrb[1].mxu0  ;;  %v2851_v58 = vcombine.high %v2849_v54, %v2849_v54  ;;  %v3020_v59 = vcombine.low %v2834_v48, %v2842_v44  ;;  %v3027_v13 = vrot.slane %v3019_v45, %v3925_v5 }
 0x23e   : > { %v3068_v60 = vcombine.low %v3060_v30, %v3067_v51  ;;  %v2626_v61 = vadd.f32 %v4383_v56, %v2625_v57  ;;  %v3036_v0 = vcombine.low %v2850_v55, %v2849_v54  ;;  %v3312_v2 = vpop.f32.mrb[2].mxu0 }
 0x23f   : > { %v2716_v29 = vcombine.high %v2634_v35, %v2634_v35  ;;  %v2723_v3 = vrot.slane %v2634_v35, %v3925_v5  ;;  %v3034_v62 = vrot.slane %v3020_v59, %v3925_v5  ;;  %v3037_v4 = vcombine.low %v2851_v58, %v2859_v33  ;;  %v2628_v25 = vpop.f32.mrb[3].mxu0 }
 0x240   : > { %3094 = vst.msk [vmem:[%s4409_s28 + $0x58] sm:$0x3f] %vm3084_vm8, %v3068_v60  ;;  %v2682_v8 = vcombine.high %v2626_v61, %v2626_v61  ;;  %v2689_v9 = vrot.slane %v2626_v61, %v3925_v5  ;;  %v3044_v11 = vrot.slane %v3036_v0, %v3925_v5  ;;  %v2637_v49 = vadd.f32 %v3312_v2, %v4383_v56 }
 0x241   : > { %v2730_v12 = vrot.slane %v2716_v29, %v3925_v5  ;;  %v2731_v14 = vcombine.high %v2723_v3, %v2723_v3  ;;  %v3035_v15 = vcombine.low %v3027_v13, %v3034_v62  ;;  %v3051_v16 = vrot.slane %v3037_v4, %v3925_v5 }
 0x242   : > { %v2696_v17 = vrot.slane %v2682_v8, %v3925_v5  ;;  %v2697_v31 = vcombine.high %v2689_v9, %v2689_v9  ;;  %v2733_v1 = vcombine.high %v2637_v49, %v2637_v49  ;;  %v2740_v19 = vrot.slane %v2637_v49, %v3925_v5 }
 0x243   : > { %v2903_v20 = vcombine.low %v2723_v3, %v2731_v14  ;;  %v3052_v21 = vcombine.low %v3044_v11, %v3051_v16  ;;  %3092 = vst.msk [vmem:[%s4409_s28 + $0x48] sm:$0xff] %vm3081_vm7, %v3035_v15  ;;  %v2732_v24 = vcombine.high %v2730_v12, %v2730_v12  ;;  %v2917_v32 = vrot.slane %v2730_v12, %v3925_v5 }
 0x244   : > { %v2698_v10 = vcombine.high %v2696_v17, %v2696_v17  ;;  %v2869_v50 = vcombine.low %v2689_v9, %v2697_v31  ;;  %v2747_v26 = vrot.slane %v2733_v1, %v3925_v5  ;;  %v2748_v27 = vcombine.high %v2740_v19, %v2740_v19 }
 0x245   : > { %v2910_v7 = vrot.slane %v2903_v20, %v3925_v5  ;;  %3093 = vst.msk [vmem:[%s4409_s28 + $0x50] sm:$0xff] %vm3081_vm7, %v3052_v21  ;;  %v2919_v63 = vcombine.low %v2732_v24, %v2740_v19  ;;  %v2629_v23 = vadd.f32 %v4383_v56, %v2628_v25 }
 0x246   : > { %v2870_v33 = vcombine.low %v2696_v17, %v2698_v10  ;;  %v2749_v34 = vcombine.high %v2747_v26, %v2747_v26  ;;  %v2920_v36 = vcombine.low %v2748_v27, %v2747_v26  ;;  %v2877_v40 = vrot.slane %v2869_v50, %v3925_v5 }
 0x247   : > { %v2918_v37 = vcombine.low %v2910_v7, %v2917_v32  ;;  %v2927_v22 = vrot.slane %v2919_v63, %v3925_v5  ;;  %v2699_v38 = vcombine.high %v2629_v23, %v2629_v23  ;;  %v2706_v39 = vrot.slane %v2629_v23, %v3925_v5 }
 0x248   : > { %v2884_v6 = vrot.slane %v2870_v33, %v3925_v5  ;;  %v2934_v41 = vrot.slane %v2920_v36, %v3925_v5  ;;  %v2936_v56 = vcombine.low %v2749_v34, %v4390_v53 }
 0x249   : > { %3085 = vst.msk [vmem:[%s4409_s28 + $0x10] sm:$0x3f] %vm3084_vm8, %v2918_v37  ;;  %v2713_v47 = vrot.slane %v2699_v38, %v3925_v5  ;;  %v2714_v42 = vcombine.high %v2706_v39, %v2706_v39 }
 0x24a   : > { %v2885_v46 = vcombine.low %v2877_v40, %v2884_v6  ;;  %v2935_v44 = vcombine.low %v2927_v22, %v2934_v41  ;;  %v2944_v28 = vrot.slane %v2936_v56, %v3925_v5 }
 0x24b   : > { %v2715_v45 = vcombine.high %v2713_v47, %v2713_v47  ;;  %v2886_v48 = vcombine.low %v2706_v39, %v2714_v42 }
 0x24c   : > { %3082 = vst.msk [vmem:[%s4409_s28] sm:$0xff] %vm3081_vm7, %v2885_v46  ;;  %v2952_v53 = vcombine.low %v2944_v28, %v2951_v43  ;;  %3086 = vst.msk [vmem:[%s4409_s28 + $0x18] sm:$0xff] %vm3081_vm7, %v2935_v44 }
 0x24d   : > { %v2887_v54 = vcombine.low %v2713_v47, %v2715_v45  ;;  %v2894_v18 = vrot.slane %v2886_v48, %v3925_v5 }
 0x24e   : > { %3087 = vst.msk [vmem:[%s4409_s28 + $0x20] sm:$0xff] %vm3081_vm7, %v2952_v53 }
 0x24f   : > { %v2901_v30 = vrot.slane %v2887_v54, %v3925_v5 }
 0x251   : > { %v2902_v51 = vcombine.low %v2894_v18, %v2901_v30 }
 0x253   : > { %3083 = vst.msk [vmem:[%s4409_s28 + $0x8] sm:$0xff] %vm3081_vm7, %v2902_v51 }
 0x254   : > { %3620 = shalt.err (!%p3617_p2)
}
 0x255   : > { %s3621_s8 = scalar_lea.hbm %s4480_s11, 1536  ;;  %s3625_s26 = scalar_lea.hbm %s4536_s3, 3072 }
 0x256   : > { %p3622_p8 = scmp.ne.s32.totalorder %s4480_s11, %s3621_s8  ;;  %p3626_p7 = scmp.lt.u32.totalorder %s4480_s11, %s4536_s3 }
 0x257   : > { %p3627_p12 = scmp.lt.u32.totalorder %s3625_s26, %s3621_s8  ;;  %p3629_p5 = scmp.lt.u32.totalorder %s3621_s8, %s4480_s11 }
 0x258   : > { %p3623_p13 = pnand %p3622_p8, %p4555_p10 }
 0x259   : > { %p3628_p3 = por %p3627_p12, %p3626_p7 }
 0x25a   : > { %p3624_p4 = pneg %p3623_p13 }
 0x25b   : > { %p3630_p11 = por %p3629_p5, %p3628_p3 }
 0x25d   : > { %p3631_p1 = pnand %p3630_p11, %p3624_p4 }
 0x25f   : > { %3634 = shalt.err (!%p3631_p1)
}
 0x260   : > { %s3707_s28 = smov 128   ;;  %s3708_s18 = smov 8  }
 0x261   : > { %3338 = dma.vmem_to_hbm [thread:$0]  (%p4555_p10), %s4482_s20, 1536, %s4480_s11, %s3096_s15, %s3707_s28, %s3707_s28, %s3708_s18  }
 0x262 PF: > { %s3126_s30 = sand.u32 1, %s3673_s12   ;;  %p4556_p0 = scmp.ne.s32.totalorder %s4547_s25, 0 }
 0x263   : > { %p4557_p6 = scmp.ge.s32.totalorder %s3693_s17, 2  ;;  %s3127_s10 = scalar_lea.sflag [#allocation4], %s3126_s30 }
 0x265   : > { %p3352_p9 = pnand %p4557_p6, %p4556_p0 }
 0x267   : > { %3668 = dma.done.wait (!%p3352_p9), %s3127_s10, 1536  }
 0x268   : > { %3670 = vsyncadd (!%p3352_p9), %s3127_s10, 4294965760  ;;  %s20_s17 = sadd.s32 1, %s3693_s17   ;;  %s4558_s12 = smov %s3677_s13 }
 0x269   : > { %p17_p2 = scmp.ge.s32.totalorder %s20_s17, 4   ;;  %s4559_s13 = smov %s3681_s14 }
 0x26a   : > { %s4560_s14 = smov %s3878_s4  ;;  %s4561_s15 = smov %s3689_s16 }
 0x26b   : > { %s4562_s16 = smov %s4564_s27  ;;  %19 = sbr.rel (!%p17_p2) target bundleno = 7 (0x7), region = 146 }
 0x272   :  { %3132 = vsyncpa [#allocation3], 1 }
 0x273   :  { %3134 = vsyncpa [#allocation3 + $0x1], 1 }
 0x274   :  { %3135 = vsyncpa [#allocation6], 1 }
 0x275   :  { %3136 = vsyncpa [#allocation4], 1 }
 0x276   :  { %3138 = vsyncpa [#allocation4 + $0x1], 1 }

</bundles_post_ra>
